<compile_context>
chip_gen: v5e
topology: v5e:2x2
jax: 0.10.0
libtpu: 0.0.40
codegen_flags: <defaults>
</compile_context>

<pallas_src>
import math
import functools

import jax
import jax.numpy as jnp
from jax import lax
from jax.experimental import pallas as pl
from jax.experimental.pallas import tpu as pltpu


def mha_kernel(q_ref, k_ref, v_ref,
               wq_ref, bq_ref, wk_ref, bk_ref, wv_ref, bv_ref,
               wo_ref, bo_ref,
               o_ref,
               kp_ref, vp_ref, ctx_ref,
               *, num_heads, depth):
    # q_ref: (1, TQ, D) bf16 query tile; k_ref / v_ref: (1, S, D) bf16 full K/V.
    # kp_ref / vp_ref: (S, D) bf16 scratch holding the projected K / V for the
    # current batch element (persist across q-tiles). ctx_ref: (TQ, D) bf16.
    t = pl.program_id(1)

    # ---- project K and V only once per batch element (first q-tile) ----------
    @pl.when(t == 0)
    def _():
        k = k_ref[0]                                         # (S, D)
        v = v_ref[0]                                         # (S, D)
        kp = jnp.dot(k, wk_ref[...], preferred_element_type=jnp.float32) + bk_ref[...]
        vp = jnp.dot(v, wv_ref[...], preferred_element_type=jnp.float32) + bv_ref[...]
        kp_ref[...] = kp.astype(jnp.bfloat16)
        vp_ref[...] = vp.astype(jnp.bfloat16)

    # ---- Q projection for this tile (1/sqrt(depth) already folded into wq/bq)
    q = q_ref[0]                                             # (TQ, D)
    qp = jnp.dot(q, wq_ref[...], preferred_element_type=jnp.float32) + bq_ref[...]
    qp_b = qp.astype(jnp.bfloat16)

    # Contract last dim of both operands (Q . K without an explicit K transpose).
    # NOTE: verified pattern; if a bundle dump ever shows a hidden per-head
    # vxpose here, store kp in depth-major layout in the scratch instead.
    dn = (((1,), (1,)), ((), ()))

    # TODO(synk): for depth < 128 on v6e/v7x, pack 2-4 heads per MXU call
    # (block-diagonal head grouping) or pad head_dim; for large num_heads switch
    # this static unroll to lax.fori_loop(unroll=2..4) to bound live ranges.
    for h in range(num_heads):
        sl = slice(h * depth, (h + 1) * depth)
        qh = qp_b[:, sl]                                     # (TQ, depth)
        kh = kp_ref[:, sl]                                   # (S,  depth)
        vh = vp_ref[:, sl]                                   # (S,  depth)

        scores = lax.dot_general(qh, kh, dimension_numbers=dn,
                                 preferred_element_type=jnp.float32)   # (TQ, S)
        # TODO(synk): optional `mask` argument of the PyTorch module not wired
        # in (forward exercised with mask=None); it would be a jnp.where on
        # `scores` before the max/exp.

        # f32 softmax epilogue with DEFERRED normalization: normalize the
        # narrow (TQ, depth) context, not the (TQ, S) probs.
        m = jnp.max(scores, axis=-1, keepdims=True)
        p = jnp.exp(scores - m)
        denom = jnp.sum(p, axis=-1, keepdims=True)           # (TQ, 1) f32

        ctx = jnp.dot(p.astype(jnp.bfloat16), vh,
                      preferred_element_type=jnp.float32)    # (TQ, depth)
        ctx = ctx * pl.reciprocal(denom, approx=True)
        ctx_ref[:, sl] = ctx.astype(jnp.bfloat16)

    # ---- single full-width output projection (contraction = D, full MXU) -----
    out = jnp.dot(ctx_ref[...], wo_ref[...], preferred_element_type=jnp.float32)
    o_ref[0] = (out + bo_ref[...]).astype(o_ref.dtype)

    # TODO(synk): for very long S (resident K/V + (TQ,S) scores exceed VMEM),
    # add a KV-tile grid axis with flash-style online softmax.
    # TODO(synk): for d_model >= 2048 on v7x, tile the projections over output
    # columns instead of keeping all four (D, D) weights resident.


def _vmem_limit_bytes():
    """~75% of physical VMEM (≈48 MiB on v7x, ≈96 MiB on v5e/v6e)."""
    cap = 64 * 1024 * 1024
    try:
        info = pltpu.get_tpu_info()
        for attr in ("vmem_capacity_bytes", "vmem_size_bytes", "vmem_bytes"):
            val = getattr(info, attr, None)
            if val:
                cap = int(val)
                break
    except Exception:
        pass
    return min((cap * 3) // 4, 112 * 1024 * 1024)


def _pick_q_tile(seq_len, vmem_limit):
    max_tq = 512 if vmem_limit >= 96 * 1024 * 1024 else 256   # v5e/v6e vs v7x
    if seq_len >= 4096:
        max_tq = 128
    for cand in (512, 256, 128, 64, 32, 16, 8):
        if cand <= max_tq and seq_len % cand == 0:
            return cand
    return seq_len  # small / irregular S: single full-sequence tile


def prepare_params(params, d_model, num_heads):
    """One-time parameter prep: fold 1/sqrt(depth) into wq/bq, cast W to bf16."""
    depth = d_model // num_heads
    scale = 1.0 / math.sqrt(float(depth))
    bf16 = jnp.bfloat16
    return {
        "wq_t": (params["wq_t"] * scale).astype(bf16),
        "bq": (params["bq"] * scale).reshape(1, d_model),    # biases stay f32
        "wk_t": params["wk_t"].astype(bf16),
        "bk": params["bk"].reshape(1, d_model),
        "wv_t": params["wv_t"].astype(bf16),
        "bv": params["bv"].reshape(1, d_model),
        "wo_t": params["wo_t"].astype(bf16),
        "bo": params["bo"].reshape(1, d_model),
    }


def multi_head_attention(q, k, v, prep, num_heads):
    """q, k, v: (B, S, D) float32. prep: output of prepare_params()."""
    B, S, D = q.shape
    assert D % num_heads == 0
    depth = D // num_heads

    vmem_limit = _vmem_limit_bytes()
    TQ = _pick_q_tile(S, vmem_limit)
    num_q_tiles = S // TQ

    kernel = functools.partial(mha_kernel, num_heads=num_heads, depth=depth)
    bf16 = jnp.bfloat16
    args = (q.astype(bf16), k.astype(bf16), v.astype(bf16),
            prep["wq_t"], prep["bq"], prep["wk_t"], prep["bk"],
            prep["wv_t"], prep["bv"], prep["wo_t"], prep["bo"])

    def build(single_buffer_weights):
        # Weight / bias block indices never change -> single buffer saves
        # 4*D^2*2 bytes of VMEM when supported.
        wkw = {"pipeline_mode": pl.Buffered(1)} if single_buffer_weights else {}
        q_spec = pl.BlockSpec((1, TQ, D), lambda b, t: (b, t, 0))
        kv_spec = pl.BlockSpec((1, S, D), lambda b, t: (b, 0, 0))   # per-batch resident
        w_spec = pl.BlockSpec((D, D), lambda b, t: (0, 0), **wkw)
        b_spec = pl.BlockSpec((1, D), lambda b, t: (0, 0), **wkw)
        return pl.pallas_call(
            kernel,
            out_shape=jax.ShapeDtypeStruct((B, S, D), q.dtype),
            grid_spec=pltpu.PrefetchScalarGridSpec(
                num_scalar_prefetch=0,
                grid=(B, num_q_tiles),
                in_specs=[q_spec, kv_spec, kv_spec,
                          w_spec, b_spec,     # wq, bq
                          w_spec, b_spec,     # wk, bk
                          w_spec, b_spec,     # wv, bv
                          w_spec, b_spec],    # dense (wo), bo
                out_specs=q_spec,
                scratch_shapes=[pltpu.VMEM((S, D), bf16),   # projected K (per batch)
                                pltpu.VMEM((S, D), bf16),   # projected V (per batch)
                                pltpu.VMEM((TQ, D), bf16)]),  # concat'd head contexts
            compiler_params=pltpu.CompilerParams(
                # q-tile axis carries the kp/vp scratch -> "arbitrary";
                # batch axis carries the megacore parallelism.
                dimension_semantics=("parallel", "arbitrary"),
                vmem_limit_bytes=vmem_limit))

    try:
        out = build(True)(*args)
        return jax.block_until_ready(out)
    except Exception:
        out = build(False)(*args)                 # older JAX: default buffering
        return jax.block_until_ready(out)


def reference_mha(q, k, v, params, num_heads):
    """Pure-JAX f32 reference reproducing the PyTorch forward exactly (mask=None)."""
    B, S, D = q.shape
    depth = D // num_heads

    def lin(x, w_t, b):
        return x @ w_t + b

    def split_heads(x):
        return x.reshape(B, S, num_heads, depth).transpose(0, 2, 1, 3)  # (B,H,S,d)

    qp = split_heads(lin(q, params["wq_t"], params["bq"]))
    kp = split_heads(lin(k, params["wk_t"], params["bk"]))
    vp = split_heads(lin(v, params["wv_t"], params["bv"]))
    scores = jnp.einsum("bhqd,bhkd->bhqk", qp, kp) / jnp.sqrt(jnp.float32(depth))
    attn = jax.nn.softmax(scores, axis=-1)
    out = jnp.einsum("bhqk,bhkd->bhqd", attn, vp)
    out = out.transpose(0, 2, 1, 3).reshape(B, S, D)
    return lin(out, params["wo_t"], params["bo"])


def init_params(key, d_model):
    # Deterministic init mimicking nn.Linear default (uniform +-1/sqrt(fan_in)).
    bound = 1.0 / math.sqrt(d_model)
    keys = jax.random.split(key, 8)

    def w(k):  # stored already transposed: (D_in, D_out)
        return jax.random.uniform(k, (d_model, d_model), jnp.float32, -bound, bound)

    def b(k):
        return jax.random.uniform(k, (d_model,), jnp.float32, -bound, bound)

    return {
        "wq_t": w(keys[0]), "bq": b(keys[1]),
        "wk_t": w(keys[2]), "bk": b(keys[3]),
        "wv_t": w(keys[4]), "bv": b(keys[5]),
        "wo_t": w(keys[6]), "bo": b(keys[7]),
    }


if __name__ == "__main__":
    B, S, D, H = 2, 8, 32, 4

    key = jax.random.PRNGKey(0)
    kq, kk, kv, kp = jax.random.split(key, 4)
    q = jax.random.normal(kq, (B, S, D), jnp.float32)
    k = jax.random.normal(kk, (B, S, D), jnp.float32)
    v = jax.random.normal(kv, (B, S, D), jnp.float32)
    params = init_params(kp, D)

    prep = prepare_params(params, D, H)          # one-time: scale fold + bf16 cast
    out = multi_head_attention(q, k, v, prep, num_heads=H)
    out = jax.block_until_ready(out)

    ref = reference_mha(q, k, v, params, num_heads=H)
    assert out.shape == (B, S, D)
    # bf16 MXU operands + approx reciprocal => slightly looser tolerance vs f32 ref.
    assert jnp.allclose(out, ref, atol=5e-2, rtol=5e-2), "mismatch vs pure-JAX reference"

    print("KERNEL_OK")
</pallas_src>

<mosaic_0001>
module attributes {stable_mosaic.version = 11 : i64} {
  func.func @mha_kernel(%arg0: i32, %arg1: i32, %arg2: memref<1x8x32xbf16, #tpu.memory_space<vmem>>, %arg3: memref<1x8x32xbf16, #tpu.memory_space<vmem>>, %arg4: memref<1x8x32xbf16, #tpu.memory_space<vmem>>, %arg5: memref<32x32xbf16, #tpu.memory_space<vmem>>, %arg6: memref<1x32xf32, #tpu.memory_space<vmem>>, %arg7: memref<32x32xbf16, #tpu.memory_space<vmem>>, %arg8: memref<1x32xf32, #tpu.memory_space<vmem>>, %arg9: memref<32x32xbf16, #tpu.memory_space<vmem>>, %arg10: memref<1x32xf32, #tpu.memory_space<vmem>>, %arg11: memref<32x32xbf16, #tpu.memory_space<vmem>>, %arg12: memref<1x32xf32, #tpu.memory_space<vmem>>, %arg13: memref<1x8x32xf32, #tpu.memory_space<vmem>>, %arg14: memref<8x32xbf16, #tpu.memory_space<vmem>>, %arg15: memref<8x32xbf16, #tpu.memory_space<vmem>>, %arg16: memref<8x32xbf16, #tpu.memory_space<vmem>>) attributes {dimension_semantics = [#tpu.dimension_semantics<parallel>, #tpu.dimension_semantics<arbitrary>], iteration_bounds = array<i64: 2, 1>, scalar_prefetch = 0 : i64, scratch_operands = 3 : i64, tpu.core_type = #tpu.core_type<tc>, window_params = [{transform_indices = @transform_0, window_bounds = array<i64: 1, 8, 32>}, {transform_indices = @transform_1, window_bounds = array<i64: 1, 8, 32>}, {transform_indices = @transform_2, window_bounds = array<i64: 1, 8, 32>}, {pipeline_mode = #tpu.pipeline_mode<synchronous>, transform_indices = @transform_3, window_bounds = array<i64: 32, 32>}, {pipeline_mode = #tpu.pipeline_mode<synchronous>, transform_indices = @transform_4, window_bounds = array<i64: 1, 32>}, {pipeline_mode = #tpu.pipeline_mode<synchronous>, transform_indices = @transform_5, window_bounds = array<i64: 32, 32>}, {pipeline_mode = #tpu.pipeline_mode<synchronous>, transform_indices = @transform_6, window_bounds = array<i64: 1, 32>}, {pipeline_mode = #tpu.pipeline_mode<synchronous>, transform_indices = @transform_7, window_bounds = array<i64: 32, 32>}, {pipeline_mode = #tpu.pipeline_mode<synchronous>, transform_indices = @transform_8, window_bounds = array<i64: 1, 32>}, {pipeline_mode = #tpu.pipeline_mode<synchronous>, transform_indices = @transform_9, window_bounds = array<i64: 32, 32>}, {pipeline_mode = #tpu.pipeline_mode<synchronous>, transform_indices = @transform_10, window_bounds = array<i64: 1, 32>}, {transform_indices = @transform_11, window_bounds = array<i64: 1, 8, 32>}]} {
    %c0_i32 = arith.constant 0 : i32
    %0 = arith.cmpi eq, %arg1, %c0_i32 : i32
    %1 = arith.extui %0 : i1 to i32
    %c0_i32_0 = arith.constant 0 : i32
    %2 = arith.cmpi ne, %1, %c0_i32_0 : i32
    scf.if %2 {
      %c0_54 = arith.constant 0 : index
      %c0_55 = arith.constant 0 : index
      %c0_56 = arith.constant 0 : index
      %92 = vector.load %arg3[%c0_54, %c0_55, %c0_56] : memref<1x8x32xbf16, #tpu.memory_space<vmem>>, vector<1x8x32xbf16>
      %93 = vector.shape_cast %92 : vector<1x8x32xbf16> to vector<8x32xbf16>
      %c0_57 = arith.constant 0 : index
      %c0_58 = arith.constant 0 : index
      %c0_59 = arith.constant 0 : index
      %94 = vector.load %arg4[%c0_57, %c0_58, %c0_59] : memref<1x8x32xbf16, #tpu.memory_space<vmem>>, vector<1x8x32xbf16>
      %95 = vector.shape_cast %94 : vector<1x8x32xbf16> to vector<8x32xbf16>
      %c0_60 = arith.constant 0 : index
      %c0_61 = arith.constant 0 : index
      %96 = vector.load %arg7[%c0_60, %c0_61] : memref<32x32xbf16, #tpu.memory_space<vmem>>, vector<32x32xbf16>
      %cst_62 = arith.constant dense<0.000000e+00> : vector<8x32xf32>
      %97 = tpu.matmul %93, %96, %cst_62 {dimension_numbers = #tpu.dot_dimension_numbers<[1], [0], [0], [1], [0, 0, 1, 1], [], []>} : vector<8x32xbf16>, vector<32x32xbf16>, vector<8x32xf32> -> vector<8x32xf32>
      %c0_63 = arith.constant 0 : index
      %c0_64 = arith.constant 0 : index
      %98 = vector.load %arg8[%c0_63, %c0_64] : memref<1x32xf32, #tpu.memory_space<vmem>>, vector<1x32xf32>
      %99 = vector.broadcast %98 : vector<1x32xf32> to vector<8x32xf32>
      %100 = arith.addf %97, %99 : vector<8x32xf32>
      %c0_65 = arith.constant 0 : index
      %c0_66 = arith.constant 0 : index
      %101 = vector.load %arg9[%c0_65, %c0_66] : memref<32x32xbf16, #tpu.memory_space<vmem>>, vector<32x32xbf16>
      %cst_67 = arith.constant dense<0.000000e+00> : vector<8x32xf32>
      %102 = tpu.matmul %95, %101, %cst_67 {dimension_numbers = #tpu.dot_dimension_numbers<[1], [0], [0], [1], [0, 0, 1, 1], [], []>} : vector<8x32xbf16>, vector<32x32xbf16>, vector<8x32xf32> -> vector<8x32xf32>
      %c0_68 = arith.constant 0 : index
      %c0_69 = arith.constant 0 : index
      %103 = vector.load %arg10[%c0_68, %c0_69] : memref<1x32xf32, #tpu.memory_space<vmem>>, vector<1x32xf32>
      %104 = vector.broadcast %103 : vector<1x32xf32> to vector<8x32xf32>
      %105 = arith.addf %102, %104 : vector<8x32xf32>
      %106 = arith.truncf %100 : vector<8x32xf32> to vector<8x32xbf16>
      %c0_70 = arith.constant 0 : index
      %c0_71 = arith.constant 0 : index
      %107 = vector.load %arg14[%c0_70, %c0_71] : memref<8x32xbf16, #tpu.memory_space<vmem>>, vector<8x32xbf16>
      tpu.vector_store %arg14[%c0_70, %c0_71], %106 {strides = array<i32>} : memref<8x32xbf16, #tpu.memory_space<vmem>>, vector<8x32xbf16>,
      %108 = arith.truncf %105 : vector<8x32xf32> to vector<8x32xbf16>
      %c0_72 = arith.constant 0 : index
      %c0_73 = arith.constant 0 : index
      %109 = vector.load %arg15[%c0_72, %c0_73] : memref<8x32xbf16, #tpu.memory_space<vmem>>, vector<8x32xbf16>
      tpu.vector_store %arg15[%c0_72, %c0_73], %108 {strides = array<i32>} : memref<8x32xbf16, #tpu.memory_space<vmem>>, vector<8x32xbf16>,
    } else {
    }
    %c0 = arith.constant 0 : index
    %c0_1 = arith.constant 0 : index
    %c0_2 = arith.constant 0 : index
    %3 = vector.load %arg2[%c0, %c0_1, %c0_2] : memref<1x8x32xbf16, #tpu.memory_space<vmem>>, vector<1x8x32xbf16>
    %4 = vector.shape_cast %3 : vector<1x8x32xbf16> to vector<8x32xbf16>
    %c0_3 = arith.constant 0 : index
    %c0_4 = arith.constant 0 : index
    %5 = vector.load %arg5[%c0_3, %c0_4] : memref<32x32xbf16, #tpu.memory_space<vmem>>, vector<32x32xbf16>
    %cst = arith.constant dense<0.000000e+00> : vector<8x32xf32>
    %6 = tpu.matmul %4, %5, %cst {dimension_numbers = #tpu.dot_dimension_numbers<[1], [0], [0], [1], [0, 0, 1, 1], [], []>} : vector<8x32xbf16>, vector<32x32xbf16>, vector<8x32xf32> -> vector<8x32xf32>
    %c0_5 = arith.constant 0 : index
    %c0_6 = arith.constant 0 : index
    %7 = vector.load %arg6[%c0_5, %c0_6] : memref<1x32xf32, #tpu.memory_space<vmem>>, vector<1x32xf32>
    %8 = vector.broadcast %7 : vector<1x32xf32> to vector<8x32xf32>
    %9 = arith.addf %6, %8 : vector<8x32xf32>
    %10 = arith.truncf %9 : vector<8x32xf32> to vector<8x32xbf16>
    %11 = vector.extract_strided_slice %10 {offsets = [0, 0], sizes = [8, 8], strides = [1, 1]} : vector<8x32xbf16> to vector<8x8xbf16>
    %c0_7 = arith.constant 0 : index
    %c0_8 = arith.constant 0 : index
    %12 = vector.load %arg14[%c0_7, %c0_8] : memref<8x32xbf16, #tpu.memory_space<vmem>>, vector<8x8xbf16>
    %c0_9 = arith.constant 0 : index
    %c0_10 = arith.constant 0 : index
    %13 = vector.load %arg15[%c0_9, %c0_10] : memref<8x32xbf16, #tpu.memory_space<vmem>>, vector<8x8xbf16>
    %cst_11 = arith.constant dense<0.000000e+00> : vector<8x8xf32>
    %14 = tpu.matmul %11, %12, %cst_11 {dimension_numbers = #tpu.dot_dimension_numbers<[1], [1], [0], [0], [0, 0, 1, 0], [], []>} : vector<8x8xbf16>, vector<8x8xbf16>, vector<8x8xf32> -> vector<8x8xf32>
    %cst_12 = arith.constant dense<0xFF800000> : vector<8xf32>
    %15 = vector.multi_reduction <maximumf>, %14, %cst_12 [1] : vector<8x8xf32> to vector<8xf32>
    %16 = vector.shape_cast %15 : vector<8xf32> to vector<8x1xf32>
    %17 = vector.broadcast %16 : vector<8x1xf32> to vector<8x8xf32>
    %18 = arith.subf %14, %17 : vector<8x8xf32>
    %19 = math.exp %18 : vector<8x8xf32>
    %cst_13 = arith.constant dense<0.000000e+00> : vector<8xf32>
    %20 = vector.multi_reduction <add>, %19, %cst_13 [1] : vector<8x8xf32> to vector<8xf32>
    %21 = vector.shape_cast %20 : vector<8xf32> to vector<8x1xf32>
    %22 = arith.truncf %19 : vector<8x8xf32> to vector<8x8xbf16>
    %cst_14 = arith.constant dense<0.000000e+00> : vector<8x8xf32>
    %23 = tpu.matmul %22, %13, %cst_14 {dimension_numbers = #tpu.dot_dimension_numbers<[1], [0], [0], [1], [0, 0, 1, 1], [], []>} : vector<8x8xbf16>, vector<8x8xbf16>, vector<8x8xf32> -> vector<8x8xf32>
    %24 = tpu.reciprocal %21 {approx = true} : vector<8x1xf32> -> vector<8x1xf32>
    %25 = vector.broadcast %24 : vector<8x1xf32> to vector<8x8xf32>
    %26 = arith.mulf %23, %25 : vector<8x8xf32>
    %27 = arith.truncf %26 : vector<8x8xf32> to vector<8x8xbf16>
    %c0_15 = arith.constant 0 : index
    %c0_16 = arith.constant 0 : index
    %28 = vector.load %arg16[%c0_15, %c0_16] : memref<8x32xbf16, #tpu.memory_space<vmem>>, vector<8x8xbf16>
    tpu.vector_store %arg16[%c0_15, %c0_16], %27 {strides = array<i32>} : memref<8x32xbf16, #tpu.memory_space<vmem>>, vector<8x8xbf16>,
    %29 = vector.extract_strided_slice %10 {offsets = [0, 8], sizes = [8, 8], strides = [1, 1]} : vector<8x32xbf16> to vector<8x8xbf16>
    %c0_17 = arith.constant 0 : index
    %c8 = arith.constant 8 : index
    %30 = vector.load %arg14[%c0_17, %c8] : memref<8x32xbf16, #tpu.memory_space<vmem>>, vector<8x8xbf16>
    %c0_18 = arith.constant 0 : index
    %c8_19 = arith.constant 8 : index
    %31 = vector.load %arg15[%c0_18, %c8_19] : memref<8x32xbf16, #tpu.memory_space<vmem>>, vector<8x8xbf16>
    %cst_20 = arith.constant dense<0.000000e+00> : vector<8x8xf32>
    %32 = tpu.matmul %29, %30, %cst_20 {dimension_numbers = #tpu.dot_dimension_numbers<[1], [1], [0], [0], [0, 0, 1, 0], [], []>} : vector<8x8xbf16>, vector<8x8xbf16>, vector<8x8xf32> -> vector<8x8xf32>
    %cst_21 = arith.constant dense<0xFF800000> : vector<8xf32>
    %33 = vector.multi_reduction <maximumf>, %32, %cst_21 [1] : vector<8x8xf32> to vector<8xf32>
    %34 = vector.shape_cast %33 : vector<8xf32> to vector<8x1xf32>
    %35 = vector.broadcast %34 : vector<8x1xf32> to vector<8x8xf32>
    %36 = arith.subf %32, %35 : vector<8x8xf32>
    %37 = math.exp %36 : vector<8x8xf32>
    %cst_22 = arith.constant dense<0.000000e+00> : vector<8xf32>
    %38 = vector.multi_reduction <add>, %37, %cst_22 [1] : vector<8x8xf32> to vector<8xf32>
    %39 = vector.shape_cast %38 : vector<8xf32> to vector<8x1xf32>
    %40 = arith.truncf %37 : vector<8x8xf32> to vector<8x8xbf16>
    %cst_23 = arith.constant dense<0.000000e+00> : vector<8x8xf32>
    %41 = tpu.matmul %40, %31, %cst_23 {dimension_numbers = #tpu.dot_dimension_numbers<[1], [0], [0], [1], [0, 0, 1, 1], [], []>} : vector<8x8xbf16>, vector<8x8xbf16>, vector<8x8xf32> -> vector<8x8xf32>
    %42 = tpu.reciprocal %39 {approx = true} : vector<8x1xf32> -> vector<8x1xf32>
    %43 = vector.broadcast %42 : vector<8x1xf32> to vector<8x8xf32>
    %44 = arith.mulf %41, %43 : vector<8x8xf32>
    %45 = arith.truncf %44 : vector<8x8xf32> to vector<8x8xbf16>
    %c0_24 = arith.constant 0 : index
    %c8_25 = arith.constant 8 : index
    %46 = vector.load %arg16[%c0_24, %c8_25] : memref<8x32xbf16, #tpu.memory_space<vmem>>, vector<8x8xbf16>
    tpu.vector_store %arg16[%c0_24, %c8_25], %45 {strides = array<i32>} : memref<8x32xbf16, #tpu.memory_space<vmem>>, vector<8x8xbf16>,
    %47 = vector.extract_strided_slice %10 {offsets = [0, 16], sizes = [8, 8], strides = [1, 1]} : vector<8x32xbf16> to vector<8x8xbf16>
    %c0_26 = arith.constant 0 : index
    %c16 = arith.constant 16 : index
    %48 = vector.load %arg14[%c0_26, %c16] : memref<8x32xbf16, #tpu.memory_space<vmem>>, vector<8x8xbf16>
    %c0_27 = arith.constant 0 : index
    %c16_28 = arith.constant 16 : index
    %49 = vector.load %arg15[%c0_27, %c16_28] : memref<8x32xbf16, #tpu.memory_space<vmem>>, vector<8x8xbf16>
    %cst_29 = arith.constant dense<0.000000e+00> : vector<8x8xf32>
    %50 = tpu.matmul %47, %48, %cst_29 {dimension_numbers = #tpu.dot_dimension_numbers<[1], [1], [0], [0], [0, 0, 1, 0], [], []>} : vector<8x8xbf16>, vector<8x8xbf16>, vector<8x8xf32> -> vector<8x8xf32>
    %cst_30 = arith.constant dense<0xFF800000> : vector<8xf32>
    %51 = vector.multi_reduction <maximumf>, %50, %cst_30 [1] : vector<8x8xf32> to vector<8xf32>
    %52 = vector.shape_cast %51 : vector<8xf32> to vector<8x1xf32>
    %53 = vector.broadcast %52 : vector<8x1xf32> to vector<8x8xf32>
    %54 = arith.subf %50, %53 : vector<8x8xf32>
    %55 = math.exp %54 : vector<8x8xf32>
    %cst_31 = arith.constant dense<0.000000e+00> : vector<8xf32>
    %56 = vector.multi_reduction <add>, %55, %cst_31 [1] : vector<8x8xf32> to vector<8xf32>
    %57 = vector.shape_cast %56 : vector<8xf32> to vector<8x1xf32>
    %58 = arith.truncf %55 : vector<8x8xf32> to vector<8x8xbf16>
    %cst_32 = arith.constant dense<0.000000e+00> : vector<8x8xf32>
    %59 = tpu.matmul %58, %49, %cst_32 {dimension_numbers = #tpu.dot_dimension_numbers<[1], [0], [0], [1], [0, 0, 1, 1], [], []>} : vector<8x8xbf16>, vector<8x8xbf16>, vector<8x8xf32> -> vector<8x8xf32>
    %60 = tpu.reciprocal %57 {approx = true} : vector<8x1xf32> -> vector<8x1xf32>
    %61 = vector.broadcast %60 : vector<8x1xf32> to vector<8x8xf32>
    %62 = arith.mulf %59, %61 : vector<8x8xf32>
    %63 = arith.truncf %62 : vector<8x8xf32> to vector<8x8xbf16>
    %c0_33 = arith.constant 0 : index
    %c16_34 = arith.constant 16 : index
    %64 = vector.load %arg16[%c0_33, %c16_34] : memref<8x32xbf16, #tpu.memory_space<vmem>>, vector<8x8xbf16>
    tpu.vector_store %arg16[%c0_33, %c16_34], %63 {strides = array<i32>} : memref<8x32xbf16, #tpu.memory_space<vmem>>, vector<8x8xbf16>,
    %65 = vector.extract_strided_slice %10 {offsets = [0, 24], sizes = [8, 8], strides = [1, 1]} : vector<8x32xbf16> to vector<8x8xbf16>
    %c0_35 = arith.constant 0 : index
    %c24 = arith.constant 24 : index
    %66 = vector.load %arg14[%c0_35, %c24] : memref<8x32xbf16, #tpu.memory_space<vmem>>, vector<8x8xbf16>
    %c0_36 = arith.constant 0 : index
    %c24_37 = arith.constant 24 : index
    %67 = vector.load %arg15[%c0_36, %c24_37] : memref<8x32xbf16, #tpu.memory_space<vmem>>, vector<8x8xbf16>
    %cst_38 = arith.constant dense<0.000000e+00> : vector<8x8xf32>
    %68 = tpu.matmul %65, %66, %cst_38 {dimension_numbers = #tpu.dot_dimension_numbers<[1], [1], [0], [0], [0, 0, 1, 0], [], []>} : vector<8x8xbf16>, vector<8x8xbf16>, vector<8x8xf32> -> vector<8x8xf32>
    %cst_39 = arith.constant dense<0xFF800000> : vector<8xf32>
    %69 = vector.multi_reduction <maximumf>, %68, %cst_39 [1] : vector<8x8xf32> to vector<8xf32>
    %70 = vector.shape_cast %69 : vector<8xf32> to vector<8x1xf32>
    %71 = vector.broadcast %70 : vector<8x1xf32> to vector<8x8xf32>
    %72 = arith.subf %68, %71 : vector<8x8xf32>
    %73 = math.exp %72 : vector<8x8xf32>
    %cst_40 = arith.constant dense<0.000000e+00> : vector<8xf32>
    %74 = vector.multi_reduction <add>, %73, %cst_40 [1] : vector<8x8xf32> to vector<8xf32>
    %75 = vector.shape_cast %74 : vector<8xf32> to vector<8x1xf32>
    %76 = arith.truncf %73 : vector<8x8xf32> to vector<8x8xbf16>
    %cst_41 = arith.constant dense<0.000000e+00> : vector<8x8xf32>
    %77 = tpu.matmul %76, %67, %cst_41 {dimension_numbers = #tpu.dot_dimension_numbers<[1], [0], [0], [1], [0, 0, 1, 1], [], []>} : vector<8x8xbf16>, vector<8x8xbf16>, vector<8x8xf32> -> vector<8x8xf32>
    %78 = tpu.reciprocal %75 {approx = true} : vector<8x1xf32> -> vector<8x1xf32>
    %79 = vector.broadcast %78 : vector<8x1xf32> to vector<8x8xf32>
    %80 = arith.mulf %77, %79 : vector<8x8xf32>
    %81 = arith.truncf %80 : vector<8x8xf32> to vector<8x8xbf16>
    %c0_42 = arith.constant 0 : index
    %c24_43 = arith.constant 24 : index
    %82 = vector.load %arg16[%c0_42, %c24_43] : memref<8x32xbf16, #tpu.memory_space<vmem>>, vector<8x8xbf16>
    tpu.vector_store %arg16[%c0_42, %c24_43], %81 {strides = array<i32>} : memref<8x32xbf16, #tpu.memory_space<vmem>>, vector<8x8xbf16>,
    %c0_44 = arith.constant 0 : index
    %c0_45 = arith.constant 0 : index
    %83 = vector.load %arg16[%c0_44, %c0_45] : memref<8x32xbf16, #tpu.memory_space<vmem>>, vector<8x32xbf16>
    %c0_46 = arith.constant 0 : index
    %c0_47 = arith.constant 0 : index
    %84 = vector.load %arg11[%c0_46, %c0_47] : memref<32x32xbf16, #tpu.memory_space<vmem>>, vector<32x32xbf16>
    %cst_48 = arith.constant dense<0.000000e+00> : vector<8x32xf32>
    %85 = tpu.matmul %83, %84, %cst_48 {dimension_numbers = #tpu.dot_dimension_numbers<[1], [0], [0], [1], [0, 0, 1, 1], [], []>} : vector<8x32xbf16>, vector<32x32xbf16>, vector<8x32xf32> -> vector<8x32xf32>
    %c0_49 = arith.constant 0 : index
    %c0_50 = arith.constant 0 : index
    %86 = vector.load %arg12[%c0_49, %c0_50] : memref<1x32xf32, #tpu.memory_space<vmem>>, vector<1x32xf32>
    %87 = vector.broadcast %86 : vector<1x32xf32> to vector<8x32xf32>
    %88 = arith.addf %85, %87 : vector<8x32xf32>
    %c0_51 = arith.constant 0 : index
    %c0_52 = arith.constant 0 : index
    %c0_53 = arith.constant 0 : index
    %89 = vector.load %arg13[%c0_51, %c0_52, %c0_53] : memref<1x8x32xf32, #tpu.memory_space<vmem>>, vector<1x8x32xf32>
    %90 = vector.shape_cast %89 : vector<1x8x32xf32> to vector<8x32xf32>
    %91 = vector.shape_cast %88 : vector<8x32xf32> to vector<1x8x32xf32>
    tpu.vector_store %arg13[%c0_51, %c0_52, %c0_53], %91 {strides = array<i32>} : memref<1x8x32xf32, #tpu.memory_space<vmem>>, vector<1x8x32xf32>,
    return
  }
  func.func @transform_0(%arg0: i32, %arg1: i32) -> (i32, i32, i32) {
    %c0_i32 = arith.constant 0 : i32
    %c0_i32_0 = arith.constant 0 : i32
    return %arg0, %arg1, %c0_i32 : i32, i32, i32
  }
  func.func @transform_1(%arg0: i32, %arg1: i32) -> (i32, i32, i32) {
    %c0_i32 = arith.constant 0 : i32
    %c0_i32_0 = arith.constant 0 : i32
    %c0_i32_1 = arith.constant 0 : i32
    return %arg0, %c0_i32, %c0_i32_0 : i32, i32, i32
  }
  func.func @transform_2(%arg0: i32, %arg1: i32) -> (i32, i32, i32) {
    %c0_i32 = arith.constant 0 : i32
    %c0_i32_0 = arith.constant 0 : i32
    %c0_i32_1 = arith.constant 0 : i32
    return %arg0, %c0_i32, %c0_i32_0 : i32, i32, i32
  }
  func.func @transform_3(%arg0: i32, %arg1: i32) -> (i32, i32) {
    %c0_i32 = arith.constant 0 : i32
    %c0_i32_0 = arith.constant 0 : i32
    %c0_i32_1 = arith.constant 0 : i32
    return %c0_i32, %c0_i32_0 : i32, i32
  }
  func.func @transform_4(%arg0: i32, %arg1: i32) -> (i32, i32) {
    %c0_i32 = arith.constant 0 : i32
    %c0_i32_0 = arith.constant 0 : i32
    %c0_i32_1 = arith.constant 0 : i32
    return %c0_i32, %c0_i32_0 : i32, i32
  }
  func.func @transform_5(%arg0: i32, %arg1: i32) -> (i32, i32) {
    %c0_i32 = arith.constant 0 : i32
    %c0_i32_0 = arith.constant 0 : i32
    %c0_i32_1 = arith.constant 0 : i32
    return %c0_i32, %c0_i32_0 : i32, i32
  }
  func.func @transform_6(%arg0: i32, %arg1: i32) -> (i32, i32) {
    %c0_i32 = arith.constant 0 : i32
    %c0_i32_0 = arith.constant 0 : i32
    %c0_i32_1 = arith.constant 0 : i32
    return %c0_i32, %c0_i32_0 : i32, i32
  }
  func.func @transform_7(%arg0: i32, %arg1: i32) -> (i32, i32) {
    %c0_i32 = arith.constant 0 : i32
    %c0_i32_0 = arith.constant 0 : i32
    %c0_i32_1 = arith.constant 0 : i32
    return %c0_i32, %c0_i32_0 : i32, i32
  }
  func.func @transform_8(%arg0: i32, %arg1: i32) -> (i32, i32) {
    %c0_i32 = arith.constant 0 : i32
    %c0_i32_0 = arith.constant 0 : i32
    %c0_i32_1 = arith.constant 0 : i32
    return %c0_i32, %c0_i32_0 : i32, i32
  }
  func.func @transform_9(%arg0: i32, %arg1: i32) -> (i32, i32) {
    %c0_i32 = arith.constant 0 : i32
    %c0_i32_0 = arith.constant 0 : i32
    %c0_i32_1 = arith.constant 0 : i32
    return %c0_i32, %c0_i32_0 : i32, i32
  }
  func.func @transform_10(%arg0: i32, %arg1: i32) -> (i32, i32) {
    %c0_i32 = arith.constant 0 : i32
    %c0_i32_0 = arith.constant 0 : i32
    %c0_i32_1 = arith.constant 0 : i32
    return %c0_i32, %c0_i32_0 : i32, i32
  }
  func.func @transform_11(%arg0: i32, %arg1: i32) -> (i32, i32, i32) {
    %c0_i32 = arith.constant 0 : i32
    %c0_i32_0 = arith.constant 0 : i32
    return %arg0, %arg1, %c0_i32 : i32, i32, i32
  }
}

module attributes {stable_mosaic.version = 11 : i64} {
  func.func @mha_kernel(%arg0: i32, %arg1: i32, %arg2: memref<1x8x32xbf16, #tpu.memory_space<vmem>>, %arg3: memref<1x8x32xbf16, #tpu.memory_space<vmem>>, %arg4: memref<1x8x32xbf16, #tpu.memory_space<vmem>>, %arg5: memref<32x32xbf16, #tpu.memory_space<vmem>>, %arg6: memref<1x32xf32, #tpu.memory_space<vmem>>, %arg7: memref<32x32xbf16, #tpu.memory_space<vmem>>, %arg8: memref<1x32xf32, #tpu.memory_space<vmem>>, %arg9: memref<32x32xbf16, #tpu.memory_space<vmem>>, %arg10: memref<1x32xf32, #tpu.memory_space<vmem>>, %arg11: memref<32x32xbf16, #tpu.memory_space<vmem>>, %arg12: memref<1x32xf32, #tpu.memory_space<vmem>>, %arg13: memref<1x8x32xf32, #tpu.memory_space<vmem>>, %arg14: memref<8x32xbf16, #tpu.memory_space<vmem>>, %arg15: memref<8x32xbf16, #tpu.memory_space<vmem>>, %arg16: memref<8x32xbf16, #tpu.memory_space<vmem>>) attributes {dimension_semantics = [#tpu.dimension_semantics<parallel>, #tpu.dimension_semantics<arbitrary>], iteration_bounds = array<i64: 2, 1>, scalar_prefetch = 0 : i64, scratch_operands = 3 : i64, tpu.core_type = #tpu.core_type<tc>, window_params = [{transform_indices = @transform_0, window_bounds = array<i64: 1, 8, 32>}, {transform_indices = @transform_1, window_bounds = array<i64: 1, 8, 32>}, {transform_indices = @transform_2, window_bounds = array<i64: 1, 8, 32>}, {pipeline_mode = #tpu.pipeline_mode<synchronous>, transform_indices = @transform_3, window_bounds = array<i64: 32, 32>}, {pipeline_mode = #tpu.pipeline_mode<synchronous>, transform_indices = @transform_4, window_bounds = array<i64: 1, 32>}, {pipeline_mode = #tpu.pipeline_mode<synchronous>, transform_indices = @transform_5, window_bounds = array<i64: 32, 32>}, {pipeline_mode = #tpu.pipeline_mode<synchronous>, transform_indices = @transform_6, window_bounds = array<i64: 1, 32>}, {pipeline_mode = #tpu.pipeline_mode<synchronous>, transform_indices = @transform_7, window_bounds = array<i64: 32, 32>}, {pipeline_mode = #tpu.pipeline_mode<synchronous>, transform_indices = @transform_8, window_bounds = array<i64: 1, 32>}, {pipeline_mode = #tpu.pipeline_mode<synchronous>, transform_indices = @transform_9, window_bounds = array<i64: 32, 32>}, {pipeline_mode = #tpu.pipeline_mode<synchronous>, transform_indices = @transform_10, window_bounds = array<i64: 1, 32>}, {transform_indices = @transform_11, window_bounds = array<i64: 1, 8, 32>}]} {
    %c0_i32 = arith.constant 0 : i32
    %0 = arith.cmpi eq, %arg1, %c0_i32 : i32
    %1 = arith.extui %0 : i1 to i32
    %c0_i32_0 = arith.constant 0 : i32
    %2 = arith.cmpi ne, %1, %c0_i32_0 : i32
    scf.if %2 {
      %c0_54 = arith.constant 0 : index
      %c0_55 = arith.constant 0 : index
      %c0_56 = arith.constant 0 : index
      %92 = vector.load %arg3[%c0_54, %c0_55, %c0_56] : memref<1x8x32xbf16, #tpu.memory_space<vmem>>, vector<1x8x32xbf16>
      %93 = vector.shape_cast %92 : vector<1x8x32xbf16> to vector<8x32xbf16>
      %c0_57 = arith.constant 0 : index
      %c0_58 = arith.constant 0 : index
      %c0_59 = arith.constant 0 : index
      %94 = vector.load %arg4[%c0_57, %c0_58, %c0_59] : memref<1x8x32xbf16, #tpu.memory_space<vmem>>, vector<1x8x32xbf16>
      %95 = vector.shape_cast %94 : vector<1x8x32xbf16> to vector<8x32xbf16>
      %c0_60 = arith.constant 0 : index
      %c0_61 = arith.constant 0 : index
      %96 = vector.load %arg7[%c0_60, %c0_61] : memref<32x32xbf16, #tpu.memory_space<vmem>>, vector<32x32xbf16>
      %cst_62 = arith.constant dense<0.000000e+00> : vector<8x32xf32>
      %97 = tpu.matmul %93, %96, %cst_62 {dimension_numbers = #tpu.dot_dimension_numbers<[1], [0], [0], [1], [0, 0, 1, 1], [], []>} : vector<8x32xbf16>, vector<32x32xbf16>, vector<8x32xf32> -> vector<8x32xf32>
      %c0_63 = arith.constant 0 : index
      %c0_64 = arith.constant 0 : index
      %98 = vector.load %arg8[%c0_63, %c0_64] : memref<1x32xf32, #tpu.memory_space<vmem>>, vector<1x32xf32>
      %99 = vector.broadcast %98 : vector<1x32xf32> to vector<8x32xf32>
      %100 = arith.addf %97, %99 : vector<8x32xf32>
      %c0_65 = arith.constant 0 : index
      %c0_66 = arith.constant 0 : index
      %101 = vector.load %arg9[%c0_65, %c0_66] : memref<32x32xbf16, #tpu.memory_space<vmem>>, vector<32x32xbf16>
      %cst_67 = arith.constant dense<0.000000e+00> : vector<8x32xf32>
      %102 = tpu.matmul %95, %101, %cst_67 {dimension_numbers = #tpu.dot_dimension_numbers<[1], [0], [0], [1], [0, 0, 1, 1], [], []>} : vector<8x32xbf16>, vector<32x32xbf16>, vector<8x32xf32> -> vector<8x32xf32>
      %c0_68 = arith.constant 0 : index
      %c0_69 = arith.constant 0 : index
      %103 = vector.load %arg10[%c0_68, %c0_69] : memref<1x32xf32, #tpu.memory_space<vmem>>, vector<1x32xf32>
      %104 = vector.broadcast %103 : vector<1x32xf32> to vector<8x32xf32>
      %105 = arith.addf %102, %104 : vector<8x32xf32>
      %106 = arith.truncf %100 : vector<8x32xf32> to vector<8x32xbf16>
      %c0_70 = arith.constant 0 : index
      %c0_71 = arith.constant 0 : index
      %107 = vector.load %arg14[%c0_70, %c0_71] : memref<8x32xbf16, #tpu.memory_space<vmem>>, vector<8x32xbf16>
      tpu.vector_store %arg14[%c0_70, %c0_71], %106 {strides = array<i32>} : memref<8x32xbf16, #tpu.memory_space<vmem>>, vector<8x32xbf16>,
      %108 = arith.truncf %105 : vector<8x32xf32> to vector<8x32xbf16>
      %c0_72 = arith.constant 0 : index
      %c0_73 = arith.constant 0 : index
      %109 = vector.load %arg15[%c0_72, %c0_73] : memref<8x32xbf16, #tpu.memory_space<vmem>>, vector<8x32xbf16>
      tpu.vector_store %arg15[%c0_72, %c0_73], %108 {strides = array<i32>} : memref<8x32xbf16, #tpu.memory_space<vmem>>, vector<8x32xbf16>,
    } else {
    }
    %c0 = arith.constant 0 : index
    %c0_1 = arith.constant 0 : index
    %c0_2 = arith.constant 0 : index
    %3 = vector.load %arg2[%c0, %c0_1, %c0_2] : memref<1x8x32xbf16, #tpu.memory_space<vmem>>, vector<1x8x32xbf16>
    %4 = vector.shape_cast %3 : vector<1x8x32xbf16> to vector<8x32xbf16>
    %c0_3 = arith.constant 0 : index
    %c0_4 = arith.constant 0 : index
    %5 = vector.load %arg5[%c0_3, %c0_4] : memref<32x32xbf16, #tpu.memory_space<vmem>>, vector<32x32xbf16>
    %cst = arith.constant dense<0.000000e+00> : vector<8x32xf32>
    %6 = tpu.matmul %4, %5, %cst {dimension_numbers = #tpu.dot_dimension_numbers<[1], [0], [0], [1], [0, 0, 1, 1], [], []>} : vector<8x32xbf16>, vector<32x32xbf16>, vector<8x32xf32> -> vector<8x32xf32>
    %c0_5 = arith.constant 0 : index
    %c0_6 = arith.constant 0 : index
    %7 = vector.load %arg6[%c0_5, %c0_6] : memref<1x32xf32, #tpu.memory_space<vmem>>, vector<1x32xf32>
    %8 = vector.broadcast %7 : vector<1x32xf32> to vector<8x32xf32>
    %9 = arith.addf %6, %8 : vector<8x32xf32>
    %10 = arith.truncf %9 : vector<8x32xf32> to vector<8x32xbf16>
    %11 = vector.extract_strided_slice %10 {offsets = [0, 0], sizes = [8, 8], strides = [1, 1]} : vector<8x32xbf16> to vector<8x8xbf16>
    %c0_7 = arith.constant 0 : index
    %c0_8 = arith.constant 0 : index
    %12 = vector.load %arg14[%c0_7, %c0_8] : memref<8x32xbf16, #tpu.memory_space<vmem>>, vector<8x8xbf16>
    %c0_9 = arith.constant 0 : index
    %c0_10 = arith.constant 0 : index
    %13 = vector.load %arg15[%c0_9, %c0_10] : memref<8x32xbf16, #tpu.memory_space<vmem>>, vector<8x8xbf16>
    %cst_11 = arith.constant dense<0.000000e+00> : vector<8x8xf32>
    %14 = tpu.matmul %11, %12, %cst_11 {dimension_numbers = #tpu.dot_dimension_numbers<[1], [1], [0], [0], [0, 0, 1, 0], [], []>} : vector<8x8xbf16>, vector<8x8xbf16>, vector<8x8xf32> -> vector<8x8xf32>
    %cst_12 = arith.constant dense<0xFF800000> : vector<8xf32>
    %15 = vector.multi_reduction <maximumf>, %14, %cst_12 [1] : vector<8x8xf32> to vector<8xf32>
    %16 = vector.shape_cast %15 : vector<8xf32> to vector<8x1xf32>
    %17 = vector.broadcast %16 : vector<8x1xf32> to vector<8x8xf32>
    %18 = arith.subf %14, %17 : vector<8x8xf32>
    %19 = math.exp %18 : vector<8x8xf32>
    %cst_13 = arith.constant dense<0.000000e+00> : vector<8xf32>
    %20 = vector.multi_reduction <add>, %19, %cst_13 [1] : vector<8x8xf32> to vector<8xf32>
    %21 = vector.shape_cast %20 : vector<8xf32> to vector<8x1xf32>
    %22 = arith.truncf %19 : vector<8x8xf32> to vector<8x8xbf16>
    %cst_14 = arith.constant dense<0.000000e+00> : vector<8x8xf32>
    %23 = tpu.matmul %22, %13, %cst_14 {dimension_numbers = #tpu.dot_dimension_numbers<[1], [0], [0], [1], [0, 0, 1, 1], [], []>} : vector<8x8xbf16>, vector<8x8xbf16>, vector<8x8xf32> -> vector<8x8xf32>
    %24 = tpu.reciprocal %21 {approx = true} : vector<8x1xf32> -> vector<8x1xf32>
    %25 = vector.broadcast %24 : vector<8x1xf32> to vector<8x8xf32>
    %26 = arith.mulf %23, %25 : vector<8x8xf32>
    %27 = arith.truncf %26 : vector<8x8xf32> to vector<8x8xbf16>
    %c0_15 = arith.constant 0 : index
    %c0_16 = arith.constant 0 : index
    %28 = vector.load %arg16[%c0_15, %c0_16] : memref<8x32xbf16, #tpu.memory_space<vmem>>, vector<8x8xbf16>
    tpu.vector_store %arg16[%c0_15, %c0_16], %27 {strides = array<i32>} : memref<8x32xbf16, #tpu.memory_space<vmem>>, vector<8x8xbf16>,
    %29 = vector.extract_strided_slice %10 {offsets = [0, 8], sizes = [8, 8], strides = [1, 1]} : vector<8x32xbf16> to vector<8x8xbf16>
    %c0_17 = arith.constant 0 : index
    %c8 = arith.constant 8 : index
    %30 = vector.load %arg14[%c0_17, %c8] : memref<8x32xbf16, #tpu.memory_space<vmem>>, vector<8x8xbf16>
    %c0_18 = arith.constant 0 : index
    %c8_19 = arith.constant 8 : index
    %31 = vector.load %arg15[%c0_18, %c8_19] : memref<8x32xbf16, #tpu.memory_space<vmem>>, vector<8x8xbf16>
    %cst_20 = arith.constant dense<0.000000e+00> : vector<8x8xf32>
    %32 = tpu.matmul %29, %30, %cst_20 {dimension_numbers = #tpu.dot_dimension_numbers<[1], [1], [0], [0], [0, 0, 1, 0], [], []>} : vector<8x8xbf16>, vector<8x8xbf16>, vector<8x8xf32> -> vector<8x8xf32>
    %cst_21 = arith.constant dense<0xFF800000> : vector<8xf32>
    %33 = vector.multi_reduction <maximumf>, %32, %cst_21 [1] : vector<8x8xf32> to vector<8xf32>
    %34 = vector.shape_cast %33 : vector<8xf32> to vector<8x1xf32>
    %35 = vector.broadcast %34 : vector<8x1xf32> to vector<8x8xf32>
    %36 = arith.subf %32, %35 : vector<8x8xf32>
    %37 = math.exp %36 : vector<8x8xf32>
    %cst_22 = arith.constant dense<0.000000e+00> : vector<8xf32>
    %38 = vector.multi_reduction <add>, %37, %cst_22 [1] : vector<8x8xf32> to vector<8xf32>
    %39 = vector.shape_cast %38 : vector<8xf32> to vector<8x1xf32>
    %40 = arith.truncf %37 : vector<8x8xf32> to vector<8x8xbf16>
    %cst_23 = arith.constant dense<0.000000e+00> : vector<8x8xf32>
    %41 = tpu.matmul %40, %31, %cst_23 {dimension_numbers = #tpu.dot_dimension_numbers<[1], [0], [0], [1], [0, 0, 1, 1], [], []>} : vector<8x8xbf16>, vector<8x8xbf16>, vector<8x8xf32> -> vector<8x8xf32>
    %42 = tpu.reciprocal %39 {approx = true} : vector<8x1xf32> -> vector<8x1xf32>
    %43 = vector.broadcast %42 : vector<8x1xf32> to vector<8x8xf32>
    %44 = arith.mulf %41, %43 : vector<8x8xf32>
    %45 = arith.truncf %44 : vector<8x8xf32> to vector<8x8xbf16>
    %c0_24 = arith.constant 0 : index
    %c8_25 = arith.constant 8 : index
    %46 = vector.load %arg16[%c0_24, %c8_25] : memref<8x32xbf16, #tpu.memory_space<vmem>>, vector<8x8xbf16>
    tpu.vector_store %arg16[%c0_24, %c8_25], %45 {strides = array<i32>} : memref<8x32xbf16, #tpu.memory_space<vmem>>, vector<8x8xbf16>,
    %47 = vector.extract_strided_slice %10 {offsets = [0, 16], sizes = [8, 8], strides = [1, 1]} : vector<8x32xbf16> to vector<8x8xbf16>
    %c0_26 = arith.constant 0 : index
    %c16 = arith.constant 16 : index
    %48 = vector.load %arg14[%c0_26, %c16] : memref<8x32xbf16, #tpu.memory_space<vmem>>, vector<8x8xbf16>
    %c0_27 = arith.constant 0 : index
    %c16_28 = arith.constant 16 : index
    %49 = vector.load %arg15[%c0_27, %c16_28] : memref<8x32xbf16, #tpu.memory_space<vmem>>, vector<8x8xbf16>
    %cst_29 = arith.constant dense<0.000000e+00> : vector<8x8xf32>
    %50 = tpu.matmul %47, %48, %cst_29 {dimension_numbers = #tpu.dot_dimension_numbers<[1], [1], [0], [0], [0, 0, 1, 0], [], []>} : vector<8x8xbf16>, vector<8x8xbf16>, vector<8x8xf32> -> vector<8x8xf32>
    %cst_30 = arith.constant dense<0xFF800000> : vector<8xf32>
    %51 = vector.multi_reduction <maximumf>, %50, %cst_30 [1] : vector<8x8xf32> to vector<8xf32>
    %52 = vector.shape_cast %51 : vector<8xf32> to vector<8x1xf32>
    %53 = vector.broadcast %52 : vector<8x1xf32> to vector<8x8xf32>
    %54 = arith.subf %50, %53 : vector<8x8xf32>
    %55 = math.exp %54 : vector<8x8xf32>
    %cst_31 = arith.constant dense<0.000000e+00> : vector<8xf32>
    %56 = vector.multi_reduction <add>, %55, %cst_31 [1] : vector<8x8xf32> to vector<8xf32>
    %57 = vector.shape_cast %56 : vector<8xf32> to vector<8x1xf32>
    %58 = arith.truncf %55 : vector<8x8xf32> to vector<8x8xbf16>
    %cst_32 = arith.constant dense<0.000000e+00> : vector<8x8xf32>
    %59 = tpu.matmul %58, %49, %cst_32 {dimension_numbers = #tpu.dot_dimension_numbers<[1], [0], [0], [1], [0, 0, 1, 1], [], []>} : vector<8x8xbf16>, vector<8x8xbf16>, vector<8x8xf32> -> vector<8x8xf32>
    %60 = tpu.reciprocal %57 {approx = true} : vector<8x1xf32> -> vector<8x1xf32>
    %61 = vector.broadcast %60 : vector<8x1xf32> to vector<8x8xf32>
    %62 = arith.mulf %59, %61 : vector<8x8xf32>
    %63 = arith.truncf %62 : vector<8x8xf32> to vector<8x8xbf16>
    %c0_33 = arith.constant 0 : index
    %c16_34 = arith.constant 16 : index
    %64 = vector.load %arg16[%c0_33, %c16_34] : memref<8x32xbf16, #tpu.memory_space<vmem>>, vector<8x8xbf16>
    tpu.vector_store %arg16[%c0_33, %c16_34], %63 {strides = array<i32>} : memref<8x32xbf16, #tpu.memory_space<vmem>>, vector<8x8xbf16>,
    %65 = vector.extract_strided_slice %10 {offsets = [0, 24], sizes = [8, 8], strides = [1, 1]} : vector<8x32xbf16> to vector<8x8xbf16>
    %c0_35 = arith.constant 0 : index
    %c24 = arith.constant 24 : index
    %66 = vector.load %arg14[%c0_35, %c24] : memref<8x32xbf16, #tpu.memory_space<vmem>>, vector<8x8xbf16>
    %c0_36 = arith.constant 0 : index
    %c24_37 = arith.constant 24 : index
    %67 = vector.load %arg15[%c0_36, %c24_37] : memref<8x32xbf16, #tpu.memory_space<vmem>>, vector<8x8xbf16>
    %cst_38 = arith.constant dense<0.000000e+00> : vector<8x8xf32>
    %68 = tpu.matmul %65, %66, %cst_38 {dimension_numbers = #tpu.dot_dimension_numbers<[1], [1], [0], [0], [0, 0, 1, 0], [], []>} : vector<8x8xbf16>, vector<8x8xbf16>, vector<8x8xf32> -> vector<8x8xf32>
    %cst_39 = arith.constant dense<0xFF800000> : vector<8xf32>
    %69 = vector.multi_reduction <maximumf>, %68, %cst_39 [1] : vector<8x8xf32> to vector<8xf32>
    %70 = vector.shape_cast %69 : vector<8xf32> to vector<8x1xf32>
    %71 = vector.broadcast %70 : vector<8x1xf32> to vector<8x8xf32>
    %72 = arith.subf %68, %71 : vector<8x8xf32>
    %73 = math.exp %72 : vector<8x8xf32>
    %cst_40 = arith.constant dense<0.000000e+00> : vector<8xf32>
    %74 = vector.multi_reduction <add>, %73, %cst_40 [1] : vector<8x8xf32> to vector<8xf32>
    %75 = vector.shape_cast %74 : vector<8xf32> to vector<8x1xf32>
    %76 = arith.truncf %73 : vector<8x8xf32> to vector<8x8xbf16>
    %cst_41 = arith.constant dense<0.000000e+00> : vector<8x8xf32>
    %77 = tpu.matmul %76, %67, %cst_41 {dimension_numbers = #tpu.dot_dimension_numbers<[1], [0], [0], [1], [0, 0, 1, 1], [], []>} : vector<8x8xbf16>, vector<8x8xbf16>, vector<8x8xf32> -> vector<8x8xf32>
    %78 = tpu.reciprocal %75 {approx = true} : vector<8x1xf32> -> vector<8x1xf32>
    %79 = vector.broadcast %78 : vector<8x1xf32> to vector<8x8xf32>
    %80 = arith.mulf %77, %79 : vector<8x8xf32>
    %81 = arith.truncf %80 : vector<8x8xf32> to vector<8x8xbf16>
    %c0_42 = arith.constant 0 : index
    %c24_43 = arith.constant 24 : index
    %82 = vector.load %arg16[%c0_42, %c24_43] : memref<8x32xbf16, #tpu.memory_space<vmem>>, vector<8x8xbf16>
    tpu.vector_store %arg16[%c0_42, %c24_43], %81 {strides = array<i32>} : memref<8x32xbf16, #tpu.memory_space<vmem>>, vector<8x8xbf16>,
    %c0_44 = arith.constant 0 : index
    %c0_45 = arith.constant 0 : index
    %83 = vector.load %arg16[%c0_44, %c0_45] : memref<8x32xbf16, #tpu.memory_space<vmem>>, vector<8x32xbf16>
    %c0_46 = arith.constant 0 : index
    %c0_47 = arith.constant 0 : index
    %84 = vector.load %arg11[%c0_46, %c0_47] : memref<32x32xbf16, #tpu.memory_space<vmem>>, vector<32x32xbf16>
    %cst_48 = arith.constant dense<0.000000e+00> : vector<8x32xf32>
    %85 = tpu.matmul %83, %84, %cst_48 {dimension_numbers = #tpu.dot_dimension_numbers<[1], [0], [0], [1], [0, 0, 1, 1], [], []>} : vector<8x32xbf16>, vector<32x32xbf16>, vector<8x32xf32> -> vector<8x32xf32>
    %c0_49 = arith.constant 0 : index
    %c0_50 = arith.constant 0 : index
    %86 = vector.load %arg12[%c0_49, %c0_50] : memref<1x32xf32, #tpu.memory_space<vmem>>, vector<1x32xf32>
    %87 = vector.broadcast %86 : vector<1x32xf32> to vector<8x32xf32>
    %88 = arith.addf %85, %87 : vector<8x32xf32>
    %c0_51 = arith.constant 0 : index
    %c0_52 = arith.constant 0 : index
    %c0_53 = arith.constant 0 : index
    %89 = vector.load %arg13[%c0_51, %c0_52, %c0_53] : memref<1x8x32xf32, #tpu.memory_space<vmem>>, vector<1x8x32xf32>
    %90 = vector.shape_cast %89 : vector<1x8x32xf32> to vector<8x32xf32>
    %91 = vector.shape_cast %88 : vector<8x32xf32> to vector<1x8x32xf32>
    tpu.vector_store %arg13[%c0_51, %c0_52, %c0_53], %91 {strides = array<i32>} : memref<1x8x32xf32, #tpu.memory_space<vmem>>, vector<1x8x32xf32>,
    return
  }
  func.func @transform_0(%arg0: i32, %arg1: i32) -> (i32, i32, i32) {
    %c0_i32 = arith.constant 0 : i32
    %c0_i32_0 = arith.constant 0 : i32
    return %arg0, %arg1, %c0_i32 : i32, i32, i32
  }
  func.func @transform_1(%arg0: i32, %arg1: i32) -> (i32, i32, i32) {
    %c0_i32 = arith.constant 0 : i32
    %c0_i32_0 = arith.constant 0 : i32
    %c0_i32_1 = arith.constant 0 : i32
    return %arg0, %c0_i32, %c0_i32_0 : i32, i32, i32
  }
  func.func @transform_2(%arg0: i32, %arg1: i32) -> (i32, i32, i32) {
    %c0_i32 = arith.constant 0 : i32
    %c0_i32_0 = arith.constant 0 : i32
    %c0_i32_1 = arith.constant 0 : i32
    return %arg0, %c0_i32, %c0_i32_0 : i32, i32, i32
  }
  func.func @transform_3(%arg0: i32, %arg1: i32) -> (i32, i32) {
    %c0_i32 = arith.constant 0 : i32
    %c0_i32_0 = arith.constant 0 : i32
    %c0_i32_1 = arith.constant 0 : i32
    return %c0_i32, %c0_i32_0 : i32, i32
  }
  func.func @transform_4(%arg0: i32, %arg1: i32) -> (i32, i32) {
    %c0_i32 = arith.constant 0 : i32
    %c0_i32_0 = arith.constant 0 : i32
    %c0_i32_1 = arith.constant 0 : i32
    return %c0_i32, %c0_i32_0 : i32, i32
  }
  func.func @transform_5(%arg0: i32, %arg1: i32) -> (i32, i32) {
    %c0_i32 = arith.constant 0 : i32
    %c0_i32_0 = arith.constant 0 : i32
    %c0_i32_1 = arith.constant 0 : i32
    return %c0_i32, %c0_i32_0 : i32, i32
  }
  func.func @transform_6(%arg0: i32, %arg1: i32) -> (i32, i32) {
    %c0_i32 = arith.constant 0 : i32
    %c0_i32_0 = arith.constant 0 : i32
    %c0_i32_1 = arith.constant 0 : i32
    return %c0_i32, %c0_i32_0 : i32, i32
  }
  func.func @transform_7(%arg0: i32, %arg1: i32) -> (i32, i32) {
    %c0_i32 = arith.constant 0 : i32
    %c0_i32_0 = arith.constant 0 : i32
    %c0_i32_1 = arith.constant 0 : i32
    return %c0_i32, %c0_i32_0 : i32, i32
  }
  func.func @transform_8(%arg0: i32, %arg1: i32) -> (i32, i32) {
    %c0_i32 = arith.constant 0 : i32
    %c0_i32_0 = arith.constant 0 : i32
    %c0_i32_1 = arith.constant 0 : i32
    return %c0_i32, %c0_i32_0 : i32, i32
  }
  func.func @transform_9(%arg0: i32, %arg1: i32) -> (i32, i32) {
    %c0_i32 = arith.constant 0 : i32
    %c0_i32_0 = arith.constant 0 : i32
    %c0_i32_1 = arith.constant 0 : i32
    return %c0_i32, %c0_i32_0 : i32, i32
  }
  func.func @transform_10(%arg0: i32, %arg1: i32) -> (i32, i32) {
    %c0_i32 = arith.constant 0 : i32
    %c0_i32_0 = arith.constant 0 : i32
    %c0_i32_1 = arith.constant 0 : i32
    return %c0_i32, %c0_i32_0 : i32, i32
  }
  func.func @transform_11(%arg0: i32, %arg1: i32) -> (i32, i32, i32) {
    %c0_i32 = arith.constant 0 : i32
    %c0_i32_0 = arith.constant 0 : i32
    return %arg0, %arg1, %c0_i32 : i32, i32, i32
  }
}

</mosaic_0001>

<bundles_post_ra>
// kernel: tpu_custom_call.1
= control target key start
LH: loop header
LB: loop body
LE: loop exit
PB: predicated region body
PF: predicated region fallthrough
CT: control target
= control target key end

     0   :  { %s2047_s0 = inlined_call_operand.hbm [shape: bf16[2,8,32], index: 0, kind: input, shape index: {}]   ;;  %s2048_s1 = inlined_call_operand.hbm [shape: bf16[2,8,32], index: 1, kind: input, shape index: {}]   ;;  %s2049_s2 = inlined_call_operand.hbm [shape: bf16[2,8,32], index: 2, kind: input, shape index: {}]   ;;  %s2050_s3 = inlined_call_operand.hbm [shape: bf16[32,32], index: 3, kind: input, shape index: {}]   ;;  %s2051_s4 = inlined_call_operand.vmem [shape: f32[1,32], index: 4, kind: input, shape index: {}]   ;;  %s2052_s5 = inlined_call_operand.hbm [shape: bf16[32,32], index: 5, kind: input, shape index: {}]   ;;  %s2053_s6 = inlined_call_operand.vmem [shape: f32[1,32], index: 6, kind: input, shape index: {}]   ;;  %s2054_s7 = inlined_call_operand.hbm [shape: bf16[32,32], index: 7, kind: input, shape index: {}]   ;;  %s2055_s8 = inlined_call_operand.vmem [shape: f32[1,32], index: 8, kind: input, shape index: {}]   ;;  %s2056_s9 = inlined_call_operand.hbm [shape: bf16[32,32], index: 9, kind: input, shape index: {}]   ;;  %s2057_s10 = inlined_call_operand.vmem [shape: f32[1,32], index: 10, kind: input, shape index: {}]   ;;  %s2058_s11 = inlined_call_operand.hbm [shape: f32[2,8,32], index: 11, kind: output, shape index: {}]  }
   0x1   :  { %2072 = sst [smem:[#allocation30_spill]] %s2047_s0 }
   0x2   :  { %2073 = sst [smem:[#allocation31_spill]] %s2048_s1 }
   0x3   :  { %2074 = sst [smem:[#allocation32_spill]] %s2050_s3 }
   0x4   :  { %2075 = sst [smem:[#allocation33_spill]] %s2052_s5 }
   0x5   :  { %2076 = sst [smem:[#allocation34_spill]] %s2054_s7 }
   0x6   :  { %2077 = sst [smem:[#allocation35_spill]] %s2056_s9 }
   0x7   :  { %2078 = sst [smem:[#allocation36_spill]] %s2057_s10 }
   0x8   :  { %16 = vsyncpa [#allocation6], 0 }
   0x9   :  { %18 = vsyncpa [#allocation6 + $0x1], 0 }
   0xa   :  { %19 = vsyncpa [#allocation9], 0 }
   0xb   :  { %21 = vsyncpa [#allocation9 + $0x1], 0 }
   0xc   :  { %22 = vsyncpa [#allocation12], 0 }
   0xd   :  { %23 = vsyncpa [#allocation15], 0 }
   0xe   :  { %24 = vsyncpa [#allocation7], 0 }
   0xf   :  { %26 = vsyncpa [#allocation7 + $0x1], 0  ;;  %s1773_s17 = smov 0   ;;  %s1775_s18 = smov 0  }
  0x10   :  { %s1777_s19 = smov 0   ;;  %s1779_s20 = smov 0  }
  0x11   :  { %s1781_s21 = smov 0   ;;  %s1783_s22 = smov 0  }
  0x12 LB: > { %2079 = sst [smem:[#allocation23_spill]] %s1679_s17  ;;  %s1804_s23 = sadd.s32 4294967295, %s1699_s22   ;;  %s1699_s22 = sphi %s1783_s22, %s32_s22   ;;  %s1695_s21 = sphi %s1781_s21, %s2109_s21   ;;  %s1691_s20 = sphi %s1779_s20, %s2108_s20   ;;  %s1687_s19 = sphi %s1777_s19, %s2112_s19   ;;  %s1683_s18 = sphi %s1775_s18, %s2111_s18   ;;  %s1679_s17 = sphi %s1773_s17, %s2110_s17  }
  0x13   : > { %2080 = sst [smem:[#allocation24_spill]] %s1695_s21  ;;  %p1177_p0 = scmp.ge.s32.totalorder %s1699_s22, 1 }
  0x14   : > { %2081 = sst [smem:[#allocation25_spill]] %s1699_s22  ;;  %p67_p1 = scmp.eq.s32.totalorder %s1804_s23, 0 }
  0x15   : > { %p325_p2 = scmp.lt.s32.totalorder %s1699_s22, 3  ;;  %s2082_s3 = sld [smem:[#allocation32_spill]] }
  0x16   : > { %s1701_s28 = smov [#allocation11]   ;;  %p1182_p6 = scmp.ge.s32.totalorder %s1699_s22, 2 }
  0x17   : > { %p1812_p3 = pnand %p1177_p0, %p325_p2  ;;  %s338_s29 = sshll.u32 %s1701_s28, 4  ;;  %s339_s29 = int_to_ptr.vmem [resolvable:$true] %s338_s29 }
  0x18   : > { %s2085_s7 = sld [smem:[#allocation34_spill]]  ;;  %s2059_s15 = smov 64  }
  0x19   : > { %p1278_p4 = pneg %p1812_p3  ;;  %s2061_s16 = smov 4  }
  0x1a   : > { %s1704_s24 = smov [#allocation14]   ;;  %s1176_s28 = sadd.s32 4294967294, %s1699_s22  }
  0x1b   : > { %s336_s26 = sshll.u32 %s2082_s3, 4  ;;  %p1820_p5 = pnand %p1278_p4, %p67_p1  ;;  %s337_s26 = int_to_ptr.hbm [resolvable:$true] %s336_s26 }
  0x1c   : > { %s372_s25 = sshll.u32 %s1704_s24, 4  ;;  %s44_s12 = sadd.s32 1, %s1695_s21  ;;  %s373_s25 = int_to_ptr.vmem [resolvable:$true] %s372_s25 }
  0x1d   : > { %1281 = dma.hbm_to_vmem [thread:$0]  (!%p1820_p5), %s337_s26, 256, %s339_s29, [#allocation12], %s2059_s15, %s2059_s15, %s2061_s16  }
  0x1e   : > { %s370_s14 = sshll.u32 %s2085_s7, 4  ;;  %p46_p7 = scmp.ge.s32.totalorder %s44_s12, 2  ;;  %s371_s14 = int_to_ptr.hbm [resolvable:$true] %s370_s14 }
  0x1f   : > { %1287 = dma.hbm_to_vmem [thread:$0]  (!%p1820_p5), %s371_s14, 256, %s373_s25, [#allocation15], %s2059_s15, %s2059_s15, %s2061_s16  }
  0x20   : > { %s53_s13 = sadd.s32 1, %s1687_s19  ;;  %p60_p8 = scmp.ne.s32.totalorder %s1687_s19, %s1683_s18 }
  0x21   : > { %p61_p9 = scmp.eq.s32.totalorder %s1699_s22, 0  ;;  %s2114_s12 = smov (%p46_p7, %s44_s12), 0 }
  0x22   : > { %2086 = sst [smem:[#allocation26_spill]] %s2114_s12  ;;  %p66_p11 = scmp.ne.s32.totalorder %s1683_s18, %s1679_s17 }
  0x23   : > { %p1846_p10 = por %p61_p9, %p60_p8  ;;  %s48_s29 = ssub.s32 %s1695_s21, %s2114_s12 }
  0x24   : > { %p312_p12 = scmp.eq.s32.totalorder %s1804_s23, 1  ;;  %p51_p13 = scmp.eq.s32.totalorder %s48_s29, 0 }
  0x25   : > { %p1857_p0 = por %p67_p1, %p66_p11  ;;  %p318_p4 = scmp.eq.s32.totalorder %s1176_s28, 1 }
  0x26   : > { %p1861_p2 = por %p312_p12, %p60_p8  ;;  %p1309_p9 = scmp.lt.s32.totalorder %s1699_s22, 2 }
  0x27   : > { %s1866_s25 = scalar_select %p51_p13, %s1687_s19, %s53_s13  }
  0x28   : > { %s2089_s24 = scalar_select %p1861_p2, 1, 0 }
  0x29   : > { %2091 = sst [smem:[#allocation28_spill]] %s1866_s25  ;;  %p1868_p7 = por %p318_p4, %p66_p11 }
  0x2a   : > { %2090 = sst [smem:[#allocation27_spill]] %s2089_s24  ;;  %s2067_s16 = sand.u32 1, %s1687_s19  }
  0x2b   : > { %s2092_s15 = scalar_select %p1868_p7, 1, 0 }
  0x2c   : > { %s1875_s3 = sshll.u32 %s1695_s21, 2  ;;  %s1879_s29 = sshll.u32 %s2067_s16, 2 }
  0x2d   : > { %2093 = sst [smem:[#allocation29_spill]] %s2092_s15  ;;  %p1883_p8 = pnand %p1309_p9, %p1846_p10 }
  0x2e   : > { %s426_s28 = sand.u32 1, %s1699_s22   ;;  %s2095_s1 = sld [smem:[#allocation31_spill]] }
  0x2f   : > { %s430_s15 = scalar_lea.vmem [#allocation8], %s1879_s29  ;;  %s2096_s5 = sld [smem:[#allocation33_spill]] }
  0x30   : > { %s438_s21 = sshll.u32 %s430_s15, 4  ;;  %s427_s24 = scalar_lea.sflag [#allocation9], %s426_s28  ;;  %s439_s21 = int_to_ptr.vmem [resolvable:$true] %s438_s21 }
  0x31   : > { %s1705_s22 = smov [#allocation13]   ;;  %s2097_s9 = sld [smem:[#allocation35_spill]] }
  0x32   : > { %s355_s12 = sshll.u32 %s1705_s22, 4  ;;  %s2099_s16 = smov 64   ;;  %s356_s12 = int_to_ptr.vmem [resolvable:$true] %s355_s12 }
  0x33   : > { %s1706_s28 = smov [#allocation16]   ;;  %s2100_s0 = sld [smem:[#allocation30_spill]] }
  0x34   : > { %s434_s25 = scalar_lea.hbm %s2095_s1, %s1875_s3  ;;  %s410_s13 = scalar_lea.vmem [#allocation5], %s1879_s29 }
  0x35   : > { %s436_s17 = sshll.u32 %s434_s25, 4  ;;  %s353_s10 = sshll.u32 %s2096_s5, 4  ;;  %s437_s17 = int_to_ptr.hbm [resolvable:$true] %s436_s17  ;;  %s354_s10 = int_to_ptr.hbm [resolvable:$true] %s353_s10 }
  0x36   : > { %1297 = dma.hbm_to_vmem [thread:$0]  (!%p1883_p8), %s437_s17, 64, %s439_s21, %s427_s24  }
  0x37   : > { %s387_s15 = sshll.u32 %s2097_s9, 4  ;;  %s2098_s25 = smov 4   ;;  %s388_s15 = int_to_ptr.hbm [resolvable:$true] %s387_s15 }
  0x38   : > { %1284 = dma.hbm_to_vmem [thread:$0]  (!%p1820_p5), %s354_s10, 256, %s356_s12, [#allocation12], %s2099_s16, %s2099_s16, %s2098_s25  }
  0x39   : > { %s389_s17 = sshll.u32 %s1706_s28, 4  ;;  %s415_s22 = scalar_lea.hbm %s2100_s0, %s1875_s3  ;;  %s390_s17 = int_to_ptr.vmem [resolvable:$true] %s389_s17 }
  0x3a   : > { %1290 = dma.hbm_to_vmem [thread:$0]  (!%p1820_p5), %s388_s15, 256, %s390_s17, [#allocation15], %s2099_s16, %s2099_s16, %s2098_s25  }
  0x3b   : > { %s417_s1 = sshll.u32 %s415_s22, 4  ;;  %s419_s5 = sshll.u32 %s410_s13, 4  ;;  %s418_s1 = int_to_ptr.hbm [resolvable:$true] %s417_s1  ;;  %s420_s5 = int_to_ptr.vmem [resolvable:$true] %s419_s5 }
  0x3c   : > { %s2101_s9 = sand.u32 1, %s1687_s19   ;;  %s453_s21 = scalar_lea.hbm %s2049_s2, %s1875_s3 }
  0x3d   : > { %s407_s10 = scalar_lea.sflag [#allocation6], %s2101_s9  ;;  %s455_s26 = sshll.u32 %s453_s21, 4  ;;  %s456_s26 = int_to_ptr.hbm [resolvable:$true] %s455_s26 }
  0x3e   : > { %1294 = dma.hbm_to_vmem [thread:$0]  (!%p1883_p8), %s418_s1, 64, %s420_s5, %s407_s10  }
  0x3f   : > { %s449_s0 = scalar_lea.vmem [#allocation10], %s1879_s29  ;;  %466 = sbr.rel (%p1812_p3) target bundleno = 1016 (0x3f8), region = 64 }
  0x40   : > { %s457_s30 = sshll.u32 %s449_s0, 4  ;;  %s1930_s15 = sand.u32 (!%p1812_p3), 1, %s1683_s18   ;;  %s458_s30 = int_to_ptr.vmem [resolvable:$true] %s457_s30 }
  0x41   : > { %1300 = dma.hbm_to_vmem [thread:$0]  (!%p1883_p8), %s456_s26, 64, %s458_s30, %s427_s24  }
  0x42   : > { %s1933_s5 = sshll.u32 (!%p1812_p3), %s1930_s15, 2  ;;  %s469_s3 = scalar_lea.sflag (!%p1812_p3), [#allocation6], %s1930_s15 }
  0x43   : > { %s472_s9 = scalar_lea.vmem (!%p1812_p3), [#allocation5], %s1933_s5 }
  0x44   : > { %1658 = dma.done.wait (%p1857_p0), %s469_s3, 64  }
  0x45   : > { %1660 = vsyncadd (%p1857_p0), %s469_s3, 4294967232  ;;  %s478_s0 = sand.u32 1, %s1804_s23   ;;  %s482_s27 = scalar_lea.vmem [#allocation8], %s1933_s5 }
  0x46   : > { %s479_s7 = scalar_lea.sflag [#allocation9], %s478_s0 }
  0x47   : > { %1662 = dma.done.wait (%p1857_p0), %s479_s7, 128  }
  0x48   : > { %1664 = vsyncadd (%p1857_p0), %s479_s7, 4294967168  ;;  %s492_s24 = scalar_lea.vmem [#allocation10], %s1933_s5 }
  0x49   : > { %1666 = dma.done.wait (%p67_p1), [#allocation12], 512  }
  0x4a   : > { %1668 = vsyncadd (%p67_p1), [#allocation12], 4294966784 }
  0x4b   : > { %1670 = dma.done.wait (%p67_p1), [#allocation15], 512  }
  0x4c   : > { %1672 = vsyncadd (%p67_p1), [#allocation15], 4294966784  ;;  %v1247_v0 = vld [vmem:[#allocation13 + $0x8] sm:$0xff]  ;;  %v1251_v1 = vld [vmem:[#allocation11 + $0x8] sm:$0xff]  ;;  %vm589_vm0 = vcmask 261120   ;;  %vm643_vm1 = vcmask 257024  }
  0x4d   : > { %v1246_v2 = vld [vmem:[#allocation13] sm:$0xff]  ;;  %599 = vmatpush.bf16.msra.mxu0 %v1247_v0  ;;  %678 = vmatpush.bf16.msra.mxu2 %v1251_v1  ;;  %v1250_v3 = vld [vmem:[#allocation11] sm:$0xff]  ;;  %v647_v5 = vld [vmem:[%s472_s9] sm:$0xf]  ;;  %vm688_vm2 = vcmask 64512   ;;  %s1707_s16 = smov 112  }
  0x4e   : > { %v567_v4 = vld [vmem:[%s482_s27] sm:$0xf]  ;;  %v1249_v6 = vld [vmem:[#allocation14 + $0x8] sm:$0xff]  ;;  %v1248_v7 = vld [vmem:[#allocation14] sm:$0xff]  ;;  %s1708_s17 = smov 120   ;;  %s1709_s22 = smov 104  }
  0x4f   : > { %635 = vmatpush.bf16.msra.mxu1 %v1249_v6  ;;  %v1375_v8 = vld [vmem:[%s2053_s6] ss:$0 sm:$0xff]  ;;  %vm721_vm3 = vcmask 1043456   ;;  %vm741_vm4 = vcmask 60416   ;;  %s1710_s10 = smov 8   ;;  %s1711_s12 = smov 16  }
  0x50   : > { %v568_v9 = vld [vmem:[%s492_s24] sm:$0xf]  ;;  %s1712_s28 = smov 24   ;;  %vm815_vm5 = vcmask 126016   ;;  %vm886_vm6 = vcmask 191616   ;;  %vm957_vm7 = vcmask 257216  }
  0x51   : > { %600 = vmatpush.bf16.msra.mxu0 %v1246_v2  ;;  %679 = vmatpush.bf16.msra.mxu2 %v1250_v3  ;;  %v1376_v13 = vld [vmem:[%s2051_s4] ss:$0 sm:$0xff]  ;;  %s1243_s21 = sshll.u32 %s1691_s20, 3  ;;  %s1197_s26 = sshll.u32 %s1930_s15, 3 }
  0x52   : > { %v1377_v32 = vld [vmem:[%s2055_s8] ss:$0 sm:$0xff]  ;;  %s1009_s9 = scalar_lea.hbm %s2058_s11, %s1243_s21  ;;  %s2103_s27 = sld [smem:[#allocation36_spill]] }
  0x53   : > { %636 = vmatpush.bf16.msra.mxu1 %v1248_v7  ;;  %s561_s24 = scalar_lea.vmem [#allocation17], %s1197_s26  ;;  %s1013_s14 = sshll.u32 %s1009_s9, 4  ;;  %s1014_s14 = int_to_ptr.hbm [resolvable:$true] %s1013_s14 }
  0x54   : > { %1206 = vmatmul.msk.bf16.vlgmr.msra.gmra.mxu0 %vm589_vm0, %v567_v4  ;;  %1224 = vmatmul.msk.bf16.vlgmr.msra.gmra.mxu2 %vm589_vm0, %v647_v5  ;;  %s1011_s23 = sshll.u32 %s561_s24, 4  ;;  %s998_s20 = scalar_lea.sflag [#allocation7], %s1930_s15  ;;  %s1012_s23 = int_to_ptr.vmem [resolvable:$true] %s1011_s23 }
  0x55   : > { %s1619_s29 = sshra.s32 %s1014_s14, 4  ;;  %s1620_s29 = int_to_ptr.hbm [resolvable:$true] %s1619_s29 }
  0x56   : > { %1215 = vmatmul.msk.bf16.vlgmr.msra.gmra.mxu1 %vm589_vm0, %v568_v9  ;;  %s1621_s25 = scalar_lea.hbm %s1620_s29, 8  ;;  %p1626_p10 = scmp.lt.s32.totalorder %s1620_s29, %s2058_s11 }
  0x57   : > { %p1622_p1 = scmp.ne.s32.totalorder %s1620_s29, %s1621_s25 }
  0x59   : > { %p1623_p3 = pnand %p1622_p1, %p1861_p2 }
  0x5b   : > { %p1624_p5 = pneg %p1623_p3 }
  0xd1   : > { %v602_v10 = vpop.f32.mrf.mxu0 }
  0xd2   : > { %v603_v11 = vadd.f32 %v1375_v8, %v602_v10 }
  0xd3   : > { %v638_v33 = vpop.f32.mrf.mxu1 }
  0xd4   : > { %v642_v12 = vpack.c.bf16 %v603_v11, %v603_v11  ;;  %v639_v34 = vadd.f32 %v1377_v32, %v638_v33 }
  0xd6   : > { %644 = vst.msk [vmem:[#allocation2] sm:$0xf] %vm643_vm1, %v642_v12  ;;  %v645_v39 = vpack.c.bf16 %v639_v34, %v639_v34 }
  0xd7   : > { %v681_v14 = vpop.f32.mrf.mxu2 }
  0xd8   : > { %v682_v15 = vadd.f32 %v1376_v13, %v681_v14  ;;  %646 = vst.msk [vmem:[#allocation3] sm:$0xf] %vm643_vm1, %v645_v39 }
  0xd9   : > { %v604_v16 = vpop.f32.mrf.mxu0 }
  0xda   : > { %v685_v17 = vpack.c.bf16 %v682_v15, %v682_v15 }
  0xdb   : > { %v640_v40 = vpop.f32.mrf.mxu1 }
  0xdc   : > { %v746_v18 = vunpack.c.l.b16 %v685_v17 }
  0xdd   : > { %v686_v19 = vld [vmem:[#allocation2] sm:$0xf] }
  0xde   : > { %v817_v20 = vld [vmem:[#allocation2] sm:$0xf]  ;;  %v747_v22 = vpack.c.b16 %v746_v18, %v746_v18  ;;  %v693_v23 = vsel %vm688_vm2, %v686_v19, 0 }
  0xdf   : > { %v743_v21 = vld [vmem:[#allocation2] sm:$0xf]  ;;  %v822_v24 = vunpack.c.l.b16 %v817_v20  ;;  %702 = vmatpush.bf16.xpose.msra.mxu3 %v693_v23  ;;  %v683_v26 = vpop.f32.mrf.mxu2  ;;  %v687_v45 = vld [vmem:[#allocation3] sm:$0xf] }
  0xe0   : > { %v751_v25 = vunpack.c.l.b16 %v743_v21  ;;  %819 = vrot.lane.b32.xlu2 %v747_v22, %s1707_s16  ;;  %v888_v29 = vld [vmem:[#allocation2] sm:$0xf]  ;;  %v723_v46 = vsel %vm721_vm3, %v687_v45, 0  ;;  %v744_v47 = vld [vmem:[#allocation3] sm:$0xf] }
  0xe1   : > { %v823_v27 = vpack.c.b16 %v822_v24, %v822_v24  ;;  %v893_v30 = vunpack.c.l.b16 %v888_v29  ;;  %732 = vmatpush.bf16.msrb.mxu0 %v723_v46  ;;  %v785_v48 = vunpack.c.l.b16 %v744_v47  ;;  %v889_v54 = vld [vmem:[#allocation3] sm:$0xf] }
  0xe2   : > { %v752_v28 = vpack.c.b16 %v751_v25, %v751_v25  ;;  %v927_v55 = vunpack.c.l.b16 %v889_v54  ;;  %v818_v12 = vld [vmem:[#allocation3] sm:$0xf] }
  0xe3   : > { %824 = vrot.lane.b32.xlu1 %v823_v27, %s1707_s16  ;;  %v894_v31 = vpack.c.b16 %v893_v30, %v893_v30  ;;  %v786_v49 = vpack.c.b16 %v785_v48, %v785_v48  ;;  %v856_v13 = vunpack.c.l.b16 %v818_v12 }
  0xe4   : > { %753 = vrot.lane.b32.xlu0 %v752_v28, %s1708_s17  ;;  %v928_v56 = vpack.c.b16 %v927_v55, %v927_v55 }
  0xe5   : > { %v857_v14 = vpack.c.b16 %v856_v13, %v856_v13 }
  0xe6   : > { %1225 = vmatmul.msk.bf16.vlgmr.msra.gmra.mxu3 %vm688_vm2, %v685_v17 }
  0xe8   : > { %890 = vrot.lane.b32.xlu2 %v747_v22, %s1709_s22 }
  0xeb   : > { %895 = vrot.lane.b32.xlu1 %v894_v31, %s1709_s22 }
  0xec   : > { %748 = vrot.lane.b32.xlu0 %v747_v22, %s1708_s17 }
  0xf0   : > { %787 = vrot.lane.b32.xlu2 %v786_v49, %s1708_s17 }
 0x13a   : > { %v820_v41 = vpop.permute.xlu2 %819 }
 0x142   : > { %v891_v52 = vpop.permute.xlu2 %890 }
 0x14a   : > { %v788_v1 = vpop.permute.xlu2 %787 }
 0x14b   : > { %v793_v2 = vsel %vm721_vm3, %v788_v1, 0  ;;  %v1378_v1 = vld [vmem:[%s2103_s27] ss:$0 sm:$0xff] }
 0x14c   : > { %802 = vmatpush.bf16.msrb.mxu2 %v793_v2 }
 0x155   : > { %v825_v35 = vpop.permute.xlu1 %824 }
 0x156   : > { %v754_v36 = vpop.permute.xlu0 %753  ;;  %v830_v38 = vsel %vm688_vm2, %v825_v35, 0 }
 0x157   : > { %v759_v37 = vsel %vm688_vm2, %v754_v36, 0  ;;  %839 = vmatpush.bf16.xpose.msrb.mxu3 %v830_v38 }
 0x158   : > { %768 = vmatpush.bf16.xpose.msrb.mxu1 %v759_v37 }
 0x15d   : > { %v896_v42 = vpop.permute.xlu1 %895 }
 0x15e   : > { %v749_v43 = vpop.permute.xlu0 %748  ;;  %v901_v44 = vsel %vm688_vm2, %v896_v42, 0  ;;  %1229 = vmatmul.msk.bf16.vlgmr.msrb.gmra.mxu3 %vm688_vm2, %v820_v41 }
 0x15f   : > { %1227 = vmatmul.msk.bf16.vlgmr.msrb.gmra.mxu1 %vm688_vm2, %v749_v43 }
 0x160   : > { %910 = vmatpush.bf16.xpose.msra.mxu1 %v901_v44 }
 0x169   : > { %v704_v50 = vpop.f32.mrf.mxu3 }
 0x16a   : > { %v708_v51 = vsel %vm688_vm2, %v704_v50, -inf }
 0x16b   : > { %709 = vmax.xlane.f32.xlu1 %v708_v51 }
 0x16f   : > { %1231 = vmatmul.msk.bf16.vlgmr.msra.gmra.mxu1 %vm688_vm2, %v891_v52 }
 0x171   : > { %v706_v53 = vpop.f32.mrf.mxu3 }
 0x184   : > { %929 = vrot.lane.b32.xlu1 %v928_v56, %s1709_s22  ;;  %s1625_s22 = scalar_lea.hbm %s2058_s11, 16 }
 0x185   : > { %p1627_p11 = scmp.lt.s32.totalorder %s1625_s22, %s1621_s25 }
 0x187   : > { %p1628_p12 = por %p1627_p11, %p1626_p10 }
 0x189   : > { %p1629_p13 = pnand %p1628_p12, %p1624_p5 }
 0x1dc   : > { %v770_v57 = vpop.f32.mrf.mxu1 }
 0x1dd   : > { %v774_v58 = vsel %vm688_vm2, %v770_v57, -inf }
 0x1de   : > { %775 = vmax.xlane.f32.xlu0 %v774_v58  ;;  %v710_v59 = vpop.xlane.xlu1 %709 }
 0x1df   : > { %v711_v60 = vsub.f32 %v704_v50, %v710_v59 }
 0x1e1   : > { %v841_v61 = vpop.f32.mrf.mxu3  ;;  %v712_v62 = vmul.f32 1.442695, %v711_v60  ;;  %v1253_v60 = vld [vmem:[#allocation16 + $0x8] sm:$0xff] }
 0x1e2   : > { %v845_v0 = vsel %vm688_vm2, %v841_v61, -inf  ;;  %989 = vmatpush.bf16.msra.mxu3 %v1253_v60 }
 0x1e3   : > { %1379 = vpow2.f32 %v712_v62 }
 0x1e4   : > { %v772_v63 = vpop.f32.mrf.mxu1 }
 0x1e6   : > { %846 = vmax.xlane.f32.xlu0 %v845_v0 }
 0x1e9   : > { %v843_v3 = vpop.f32.mrf.mxu3  ;;  %v1380_v4 = vpop.eup %1379 }
 0x1ea   : > { %v714_v6 = vsel %vm688_vm2, %v1380_v4, 0.0  ;;  %v717_v7 = vpack.c.bf16 %v1380_v4, %v1380_v4 }
 0x1eb   : > { %715 = vadd.xlane.f32.xlu1 %v714_v6 }
 0x1ec   : > { %v912_v5 = vpop.f32.mrf.mxu1  ;;  %1226 = vmatmul.msk.bf16.vlgmr.msrb.gmra.mxu0 %vm688_vm2, %v717_v7 }
 0x1ed   : > { %v916_v8 = vsel %vm688_vm2, %v912_v5, -inf }
 0x1ee   : > { %917 = vmax.xlane.f32.xlu2 %v916_v8 }
 0x1f4   : > { %v914_v9 = vpop.f32.mrf.mxu1 }
 0x1f6   : > { %v930_v10 = vpop.permute.xlu1 %929 }
 0x1f7   : > { %v935_v11 = vsel %vm721_vm3, %v930_v10, 0 }
 0x1f8   : > { %944 = vmatpush.bf16.msra.mxu2 %v935_v11 }
 0x206   : > { %858 = vrot.lane.b32.xlu2 %v857_v14, %s1707_s16 }
 0x251   : > { %v776_v15 = vpop.xlane.xlu0 %775 }
 0x252   : > { %v777_v16 = vsub.f32 %v770_v57, %v776_v15 }
 0x254   : > { %v778_v17 = vmul.f32 1.442695, %v777_v16 }
 0x256   : > { %1381 = vpow2.f32 %v778_v17 }
 0x259   : > { %v847_v18 = vpop.xlane.xlu0 %846 }
 0x25a   : > { %v848_v19 = vsub.f32 %v841_v61, %v847_v18  ;;  %v1252_v61 = vld [vmem:[#allocation16] sm:$0xff] }
 0x25b   : > { %990 = vmatpush.bf16.msra.mxu3 %v1252_v61 }
 0x25c   : > { %v1382_v20 = vpop.eup %1381  ;;  %v849_v21 = vmul.f32 1.442695, %v848_v19 }
 0x25d   : > { %v780_v22 = vsel %vm688_vm2, %v1382_v20, 0.0  ;;  %v783_v23 = vpack.c.bf16 %v1382_v20, %v1382_v20 }
 0x25e   : > { %1383 = vpow2.f32 %v849_v21  ;;  %781 = vadd.xlane.f32.xlu0 %v780_v22  ;;  %v716_v25 = vpop.xlane.xlu1 %715 }
 0x25f   : > { %1228 = vmatmul.msk.bf16.vlgmr.msrb.gmra.mxu2 %vm688_vm2, %v783_v23  ;;  %1385 = vrcp.f32 %v716_v25 }
 0x261   : > { %v918_v24 = vpop.xlane.xlu2 %917 }
 0x262   : > { %v919_v26 = vsub.f32 %v912_v5, %v918_v24 }
 0x264   : > { %v1384_v27 = vpop.eup %1383  ;;  %v920_v28 = vmul.f32 1.442695, %v919_v26 }
 0x265   : > { %v851_v29 = vsel %vm688_vm2, %v1384_v27, 0.0  ;;  %v1386_v32 = vpop.eup %1385  ;;  %v854_v35 = vpack.c.bf16 %v1384_v27, %v1384_v27 }
 0x266   : > { %1387 = vpow2.f32 %v920_v28  ;;  %852 = vadd.xlane.f32.xlu0 %v851_v29 }
 0x269   : > { %v859_v30 = vpop.permute.xlu2 %858  ;;  %v734_v33 = vpop.f32.mrf.mxu0 }
 0x26a   : > { %v864_v31 = vsel %vm721_vm3, %v859_v30, 0  ;;  %v739_v36 = vmul.f32 %v1386_v32, %v734_v33 }
 0x26b   : > { %873 = vmatpush.bf16.msra.mxu0 %v864_v31 }
 0x26c   : > { %v1388_v34 = vpop.eup %1387  ;;  %v740_v39 = vpack.c.bf16 %v739_v36, %v739_v36 }
 0x26d   : > { %v925_v37 = vpack.c.bf16 %v1388_v34, %v1388_v34  ;;  %v922_v38 = vsel %vm688_vm2, %v1388_v34, 0.0 }
 0x26e   : > { %1230 = vmatmul.msk.bf16.vlgmr.msra.gmra.mxu0 %vm688_vm2, %v854_v35  ;;  %923 = vadd.xlane.f32.xlu0 %v922_v38  ;;  %742 = vst.msk [vmem:[#allocation4] sm:$0xf] %vm741_vm4, %v740_v39 }
 0x26f   : > { %1232 = vmatmul.msk.bf16.vlgmr.msra.gmra.mxu2 %vm688_vm2, %v925_v37 }
 0x271   : > { %v736_v40 = vpop.f32.mrf.mxu0 }
 0x2d1   : > { %v782_v41 = vpop.xlane.xlu0 %781 }
 0x2d2   : > { %1389 = vrcp.f32 %v782_v41 }
 0x2d8   : > { %v1390_v43 = vpop.eup %1389 }
 0x2d9   : > { %v853_v42 = vpop.xlane.xlu0 %852 }
 0x2da   : > { %1391 = vrcp.f32 %v853_v42 }
 0x2e0   : > { %v1392_v49 = vpop.eup %1391 }
 0x2e1   : > { %v924_v47 = vpop.xlane.xlu0 %923 }
 0x2e2   : > { %v804_v44 = vpop.f32.mrf.mxu2  ;;  %1393 = vrcp.f32 %v924_v47 }
 0x2e3   : > { %v809_v45 = vmul.f32 %v1390_v43, %v804_v44 }
 0x2e5   : > { %v810_v46 = vpack.c.bf16 %v809_v45, %v809_v45 }
 0x2e7   : > { %812 = vrot.lane.b32.xlu2 %v810_v46, %s1710_s10 }
 0x2e8   : > { %v1394_v53 = vpop.eup %1393 }
 0x2ea   : > { %v806_v48 = vpop.f32.mrf.mxu2 }
 0x2eb   : > { %v875_v50 = vpop.f32.mrf.mxu0 }
 0x2ec   : > { %v880_v51 = vmul.f32 %v1392_v49, %v875_v50 }
 0x2ee   : > { %v881_v52 = vpack.c.bf16 %v880_v51, %v880_v51 }
 0x2f0   : > { %883 = vrot.lane.b32.xlu0 %v881_v52, %s1711_s12 }
 0x2f2   : > { %v946_v54 = vpop.f32.mrf.mxu2 }
 0x2f3   : > { %v951_v55 = vmul.f32 %v1394_v53, %v946_v54  ;;  %v877_v56 = vpop.f32.mrf.mxu0 }
 0x2f5   : > { %v952_v57 = vpack.c.bf16 %v951_v55, %v951_v55 }
 0x2f7   : > { %954 = vrot.lane.b32.xlu2 %v952_v57, %s1712_s28 }
 0x2fa   : > { %v948_v58 = vpop.f32.mrf.mxu2 }
 0x341   : > { %v813_v59 = vpop.permute.xlu2 %812 }
 0x342   : > { %816 = vst.msk [vmem:[#allocation4] sm:$0xf] %vm815_vm5, %v813_v59 }
 0x351   : > { %v955_v63 = vpop.permute.xlu2 %954 }
 0x362   : > { %v884_v62 = vpop.permute.xlu0 %883 }
 0x363   : > { %887 = vst.msk [vmem:[#allocation4] sm:$0xf] %vm886_vm6, %v884_v62 }
 0x364   : > { %958 = vst.msk [vmem:[#allocation4] sm:$0xf] %vm957_vm7, %v955_v63 }
 0x36b   : > { %v959_v0 = vld [vmem:[#allocation4] sm:$0xf] }
 0x36c   : > { %1241 = vmatmul.msk.bf16.vlgmr.msra.gmra.mxu3 %vm589_vm0, %v959_v0 }
 0x3ef   : > { %v992_v2 = vpop.f32.mrf.mxu3 }
 0x3f0   : > { %v993_v3 = vadd.f32 %v1378_v1, %v992_v2 }
 0x3f2   : > { %996 = vst.msk [vmem:[%s561_s24] sm:$0xff] %vm589_vm0, %v993_v3 }
 0x3f3   : > { %1632 = shalt.err (!%p1629_p13)
}
 0x3f4   : > { %1276 = dma.vmem_to_hbm [thread:$0]  (%p1861_p2), %s1012_s23, 128, %s1014_s14, %s998_s20  }
 0x3f7   : > { %v994_v4 = vpop.f32.mrf.mxu3 }
 0x3f8 PF: > { %s2104_s15 = sld [smem:[#allocation23_spill]]  ;;  %p1302_p0 = pnand %p1182_p6, %p1868_p7 }
 0x3f9   : > { %s2106_s12 = sld [smem:[#allocation25_spill]] }
 0x3fa   : > { %p1303_p4 = pneg %p1302_p0 }
 0x3fe   : > { %s1025_s28 = sand.u32 1, %s2104_s15  }
 0x3ff   : > { %s1026_s21 = scalar_lea.sflag [#allocation7], %s1025_s28 }
 0x400   : > { %1674 = dma.done.wait (%p1303_p4), %s1026_s21, 128  }
 0x401   : > { %1676 = vsyncadd (%p1303_p4), %s1026_s21, 4294967168  ;;  %s32_s22 = sadd.s32 1, %s2106_s12   ;;  %s2107_s26 = sld [smem:[#allocation28_spill]] }
 0x402   : > { %p29_p9 = scmp.ge.s32.totalorder %s32_s22, 4   ;;  %s2108_s20 = sld [smem:[#allocation24_spill]] }
 0x403   : > { %s2109_s21 = sld [smem:[#allocation26_spill]]  ;;  %s2110_s17 = smov %s1683_s18 }
 0x404   : > { %s2111_s18 = smov %s1687_s19  ;;  %31 = sbr.rel (!%p29_p9) target bundleno = 18 (0x12), region = 153 }
 0x407   : > { %s2112_s19 = smov %s2107_s26 }
 0x409   :  { %1032 = vsyncpa [#allocation6], 1 }
 0x40a   :  { %1034 = vsyncpa [#allocation6 + $0x1], 1 }
 0x40b   :  { %1035 = vsyncpa [#allocation9], 1 }
 0x40c   :  { %1037 = vsyncpa [#allocation9 + $0x1], 1 }
 0x40d   :  { %1038 = vsyncpa [#allocation12], 1 }
 0x40e   :  { %1039 = vsyncpa [#allocation15], 1 }
 0x40f   :  { %1040 = vsyncpa [#allocation7], 1 }
 0x410   :  { %1042 = vsyncpa [#allocation7 + $0x1], 1 }

// kernel: tpu_custom_call.1
= control target key start
LH: loop header
LB: loop body
LE: loop exit
PB: predicated region body
PF: predicated region fallthrough
CT: control target
= control target key end

     0   :  { %s2047_s0 = inlined_call_operand.hbm [shape: bf16[2,8,32], index: 0, kind: input, shape index: {}]   ;;  %s2048_s1 = inlined_call_operand.hbm [shape: bf16[2,8,32], index: 1, kind: input, shape index: {}]   ;;  %s2049_s2 = inlined_call_operand.hbm [shape: bf16[2,8,32], index: 2, kind: input, shape index: {}]   ;;  %s2050_s3 = inlined_call_operand.hbm [shape: bf16[32,32], index: 3, kind: input, shape index: {}]   ;;  %s2051_s4 = inlined_call_operand.vmem [shape: f32[1,32], index: 4, kind: input, shape index: {}]   ;;  %s2052_s5 = inlined_call_operand.hbm [shape: bf16[32,32], index: 5, kind: input, shape index: {}]   ;;  %s2053_s6 = inlined_call_operand.vmem [shape: f32[1,32], index: 6, kind: input, shape index: {}]   ;;  %s2054_s7 = inlined_call_operand.hbm [shape: bf16[32,32], index: 7, kind: input, shape index: {}]   ;;  %s2055_s8 = inlined_call_operand.vmem [shape: f32[1,32], index: 8, kind: input, shape index: {}]   ;;  %s2056_s9 = inlined_call_operand.hbm [shape: bf16[32,32], index: 9, kind: input, shape index: {}]   ;;  %s2057_s10 = inlined_call_operand.vmem [shape: f32[1,32], index: 10, kind: input, shape index: {}]   ;;  %s2058_s11 = inlined_call_operand.hbm [shape: f32[2,8,32], index: 11, kind: output, shape index: {}]  }
   0x1   :  { %2072 = sst [smem:[#allocation30_spill]] %s2047_s0 }
   0x2   :  { %2073 = sst [smem:[#allocation31_spill]] %s2048_s1 }
   0x3   :  { %2074 = sst [smem:[#allocation32_spill]] %s2050_s3 }
   0x4   :  { %2075 = sst [smem:[#allocation33_spill]] %s2052_s5 }
   0x5   :  { %2076 = sst [smem:[#allocation34_spill]] %s2054_s7 }
   0x6   :  { %2077 = sst [smem:[#allocation35_spill]] %s2056_s9 }
   0x7   :  { %2078 = sst [smem:[#allocation36_spill]] %s2057_s10 }
   0x8   :  { %16 = vsyncpa [#allocation6], 0 }
   0x9   :  { %18 = vsyncpa [#allocation6 + $0x1], 0 }
   0xa   :  { %19 = vsyncpa [#allocation9], 0 }
   0xb   :  { %21 = vsyncpa [#allocation9 + $0x1], 0 }
   0xc   :  { %22 = vsyncpa [#allocation12], 0 }
   0xd   :  { %23 = vsyncpa [#allocation15], 0 }
   0xe   :  { %24 = vsyncpa [#allocation7], 0 }
   0xf   :  { %26 = vsyncpa [#allocation7 + $0x1], 0  ;;  %s1773_s17 = smov 0   ;;  %s1775_s18 = smov 0  }
  0x10   :  { %s1777_s19 = smov 0   ;;  %s1779_s20 = smov 0  }
  0x11   :  { %s1781_s21 = smov 0   ;;  %s1783_s22 = smov 0  }
  0x12 LB: > { %2079 = sst [smem:[#allocation23_spill]] %s1679_s17  ;;  %s1804_s23 = sadd.s32 4294967295, %s1699_s22   ;;  %s1699_s22 = sphi %s1783_s22, %s32_s22   ;;  %s1695_s21 = sphi %s1781_s21, %s2109_s21   ;;  %s1691_s20 = sphi %s1779_s20, %s2108_s20   ;;  %s1687_s19 = sphi %s1777_s19, %s2112_s19   ;;  %s1683_s18 = sphi %s1775_s18, %s2111_s18   ;;  %s1679_s17 = sphi %s1773_s17, %s2110_s17  }
  0x13   : > { %2080 = sst [smem:[#allocation24_spill]] %s1695_s21  ;;  %p1177_p0 = scmp.ge.s32.totalorder %s1699_s22, 1 }
  0x14   : > { %2081 = sst [smem:[#allocation25_spill]] %s1699_s22  ;;  %p67_p1 = scmp.eq.s32.totalorder %s1804_s23, 0 }
  0x15   : > { %p325_p2 = scmp.lt.s32.totalorder %s1699_s22, 3  ;;  %s2082_s3 = sld [smem:[#allocation32_spill]] }
  0x16   : > { %s1701_s28 = smov [#allocation11]   ;;  %p1182_p6 = scmp.ge.s32.totalorder %s1699_s22, 2 }
  0x17   : > { %p1812_p3 = pnand %p1177_p0, %p325_p2  ;;  %s338_s29 = sshll.u32 %s1701_s28, 4  ;;  %s339_s29 = int_to_ptr.vmem [resolvable:$true] %s338_s29 }
  0x18   : > { %s2085_s7 = sld [smem:[#allocation34_spill]]  ;;  %s2059_s15 = smov 64  }
  0x19   : > { %p1278_p4 = pneg %p1812_p3  ;;  %s2061_s16 = smov 4  }
  0x1a   : > { %s1704_s24 = smov [#allocation14]   ;;  %s1176_s28 = sadd.s32 4294967294, %s1699_s22  }
  0x1b   : > { %s336_s26 = sshll.u32 %s2082_s3, 4  ;;  %p1820_p5 = pnand %p1278_p4, %p67_p1  ;;  %s337_s26 = int_to_ptr.hbm [resolvable:$true] %s336_s26 }
  0x1c   : > { %s372_s25 = sshll.u32 %s1704_s24, 4  ;;  %s44_s12 = sadd.s32 1, %s1695_s21  ;;  %s373_s25 = int_to_ptr.vmem [resolvable:$true] %s372_s25 }
  0x1d   : > { %1281 = dma.hbm_to_vmem [thread:$0]  (!%p1820_p5), %s337_s26, 256, %s339_s29, [#allocation12], %s2059_s15, %s2059_s15, %s2061_s16  }
  0x1e   : > { %s370_s14 = sshll.u32 %s2085_s7, 4  ;;  %p46_p7 = scmp.ge.s32.totalorder %s44_s12, 2  ;;  %s371_s14 = int_to_ptr.hbm [resolvable:$true] %s370_s14 }
  0x1f   : > { %1287 = dma.hbm_to_vmem [thread:$0]  (!%p1820_p5), %s371_s14, 256, %s373_s25, [#allocation15], %s2059_s15, %s2059_s15, %s2061_s16  }
  0x20   : > { %s53_s13 = sadd.s32 1, %s1687_s19  ;;  %p60_p8 = scmp.ne.s32.totalorder %s1687_s19, %s1683_s18 }
  0x21   : > { %p61_p9 = scmp.eq.s32.totalorder %s1699_s22, 0  ;;  %s2114_s12 = smov (%p46_p7, %s44_s12), 0 }
  0x22   : > { %2086 = sst [smem:[#allocation26_spill]] %s2114_s12  ;;  %p66_p11 = scmp.ne.s32.totalorder %s1683_s18, %s1679_s17 }
  0x23   : > { %p1846_p10 = por %p61_p9, %p60_p8  ;;  %s48_s29 = ssub.s32 %s1695_s21, %s2114_s12 }
  0x24   : > { %p312_p12 = scmp.eq.s32.totalorder %s1804_s23, 1  ;;  %p51_p13 = scmp.eq.s32.totalorder %s48_s29, 0 }
  0x25   : > { %p1857_p0 = por %p67_p1, %p66_p11  ;;  %p318_p4 = scmp.eq.s32.totalorder %s1176_s28, 1 }
  0x26   : > { %p1861_p2 = por %p312_p12, %p60_p8  ;;  %p1309_p9 = scmp.lt.s32.totalorder %s1699_s22, 2 }
  0x27   : > { %s1866_s25 = scalar_select %p51_p13, %s1687_s19, %s53_s13  }
  0x28   : > { %s2089_s24 = scalar_select %p1861_p2, 1, 0 }
  0x29   : > { %2091 = sst [smem:[#allocation28_spill]] %s1866_s25  ;;  %p1868_p7 = por %p318_p4, %p66_p11 }
  0x2a   : > { %2090 = sst [smem:[#allocation27_spill]] %s2089_s24  ;;  %s2067_s16 = sand.u32 1, %s1687_s19  }
  0x2b   : > { %s2092_s15 = scalar_select %p1868_p7, 1, 0 }
  0x2c   : > { %s1875_s3 = sshll.u32 %s1695_s21, 2  ;;  %s1879_s29 = sshll.u32 %s2067_s16, 2 }
  0x2d   : > { %2093 = sst [smem:[#allocation29_spill]] %s2092_s15  ;;  %p1883_p8 = pnand %p1309_p9, %p1846_p10 }
  0x2e   : > { %s426_s28 = sand.u32 1, %s1699_s22   ;;  %s2095_s1 = sld [smem:[#allocation31_spill]] }
  0x2f   : > { %s430_s15 = scalar_lea.vmem [#allocation8], %s1879_s29  ;;  %s2096_s5 = sld [smem:[#allocation33_spill]] }
  0x30   : > { %s438_s21 = sshll.u32 %s430_s15, 4  ;;  %s427_s24 = scalar_lea.sflag [#allocation9], %s426_s28  ;;  %s439_s21 = int_to_ptr.vmem [resolvable:$true] %s438_s21 }
  0x31   : > { %s1705_s22 = smov [#allocation13]   ;;  %s2097_s9 = sld [smem:[#allocation35_spill]] }
  0x32   : > { %s355_s12 = sshll.u32 %s1705_s22, 4  ;;  %s2099_s16 = smov 64   ;;  %s356_s12 = int_to_ptr.vmem [resolvable:$true] %s355_s12 }
  0x33   : > { %s1706_s28 = smov [#allocation16]   ;;  %s2100_s0 = sld [smem:[#allocation30_spill]] }
  0x34   : > { %s434_s25 = scalar_lea.hbm %s2095_s1, %s1875_s3  ;;  %s410_s13 = scalar_lea.vmem [#allocation5], %s1879_s29 }
  0x35   : > { %s436_s17 = sshll.u32 %s434_s25, 4  ;;  %s353_s10 = sshll.u32 %s2096_s5, 4  ;;  %s437_s17 = int_to_ptr.hbm [resolvable:$true] %s436_s17  ;;  %s354_s10 = int_to_ptr.hbm [resolvable:$true] %s353_s10 }
  0x36   : > { %1297 = dma.hbm_to_vmem [thread:$0]  (!%p1883_p8), %s437_s17, 64, %s439_s21, %s427_s24  }
  0x37   : > { %s387_s15 = sshll.u32 %s2097_s9, 4  ;;  %s2098_s25 = smov 4   ;;  %s388_s15 = int_to_ptr.hbm [resolvable:$true] %s387_s15 }
  0x38   : > { %1284 = dma.hbm_to_vmem [thread:$0]  (!%p1820_p5), %s354_s10, 256, %s356_s12, [#allocation12], %s2099_s16, %s2099_s16, %s2098_s25  }
  0x39   : > { %s389_s17 = sshll.u32 %s1706_s28, 4  ;;  %s415_s22 = scalar_lea.hbm %s2100_s0, %s1875_s3  ;;  %s390_s17 = int_to_ptr.vmem [resolvable:$true] %s389_s17 }
  0x3a   : > { %1290 = dma.hbm_to_vmem [thread:$0]  (!%p1820_p5), %s388_s15, 256, %s390_s17, [#allocation15], %s2099_s16, %s2099_s16, %s2098_s25  }
  0x3b   : > { %s417_s1 = sshll.u32 %s415_s22, 4  ;;  %s419_s5 = sshll.u32 %s410_s13, 4  ;;  %s418_s1 = int_to_ptr.hbm [resolvable:$true] %s417_s1  ;;  %s420_s5 = int_to_ptr.vmem [resolvable:$true] %s419_s5 }
  0x3c   : > { %s2101_s9 = sand.u32 1, %s1687_s19   ;;  %s453_s21 = scalar_lea.hbm %s2049_s2, %s1875_s3 }
  0x3d   : > { %s407_s10 = scalar_lea.sflag [#allocation6], %s2101_s9  ;;  %s455_s26 = sshll.u32 %s453_s21, 4  ;;  %s456_s26 = int_to_ptr.hbm [resolvable:$true] %s455_s26 }
  0x3e   : > { %1294 = dma.hbm_to_vmem [thread:$0]  (!%p1883_p8), %s418_s1, 64, %s420_s5, %s407_s10  }
  0x3f   : > { %s449_s0 = scalar_lea.vmem [#allocation10], %s1879_s29  ;;  %466 = sbr.rel (%p1812_p3) target bundleno = 1016 (0x3f8), region = 64 }
  0x40   : > { %s457_s30 = sshll.u32 %s449_s0, 4  ;;  %s1930_s15 = sand.u32 (!%p1812_p3), 1, %s1683_s18   ;;  %s458_s30 = int_to_ptr.vmem [resolvable:$true] %s457_s30 }
  0x41   : > { %1300 = dma.hbm_to_vmem [thread:$0]  (!%p1883_p8), %s456_s26, 64, %s458_s30, %s427_s24  }
  0x42   : > { %s1933_s5 = sshll.u32 (!%p1812_p3), %s1930_s15, 2  ;;  %s469_s3 = scalar_lea.sflag (!%p1812_p3), [#allocation6], %s1930_s15 }
  0x43   : > { %s472_s9 = scalar_lea.vmem (!%p1812_p3), [#allocation5], %s1933_s5 }
  0x44   : > { %1658 = dma.done.wait (%p1857_p0), %s469_s3, 64  }
  0x45   : > { %1660 = vsyncadd (%p1857_p0), %s469_s3, 4294967232  ;;  %s478_s0 = sand.u32 1, %s1804_s23   ;;  %s482_s27 = scalar_lea.vmem [#allocation8], %s1933_s5 }
  0x46   : > { %s479_s7 = scalar_lea.sflag [#allocation9], %s478_s0 }
  0x47   : > { %1662 = dma.done.wait (%p1857_p0), %s479_s7, 128  }
  0x48   : > { %1664 = vsyncadd (%p1857_p0), %s479_s7, 4294967168  ;;  %s492_s24 = scalar_lea.vmem [#allocation10], %s1933_s5 }
  0x49   : > { %1666 = dma.done.wait (%p67_p1), [#allocation12], 512  }
  0x4a   : > { %1668 = vsyncadd (%p67_p1), [#allocation12], 4294966784 }
  0x4b   : > { %1670 = dma.done.wait (%p67_p1), [#allocation15], 512  }
  0x4c   : > { %1672 = vsyncadd (%p67_p1), [#allocation15], 4294966784  ;;  %v1247_v0 = vld [vmem:[#allocation13 + $0x8] sm:$0xff]  ;;  %v1251_v1 = vld [vmem:[#allocation11 + $0x8] sm:$0xff]  ;;  %vm589_vm0 = vcmask 261120   ;;  %vm643_vm1 = vcmask 257024  }
  0x4d   : > { %v1246_v2 = vld [vmem:[#allocation13] sm:$0xff]  ;;  %599 = vmatpush.bf16.msra.mxu0 %v1247_v0  ;;  %678 = vmatpush.bf16.msra.mxu2 %v1251_v1  ;;  %v1250_v3 = vld [vmem:[#allocation11] sm:$0xff]  ;;  %v647_v5 = vld [vmem:[%s472_s9] sm:$0xf]  ;;  %vm688_vm2 = vcmask 64512   ;;  %s1707_s16 = smov 112  }
  0x4e   : > { %v567_v4 = vld [vmem:[%s482_s27] sm:$0xf]  ;;  %v1249_v6 = vld [vmem:[#allocation14 + $0x8] sm:$0xff]  ;;  %v1248_v7 = vld [vmem:[#allocation14] sm:$0xff]  ;;  %s1708_s17 = smov 120   ;;  %s1709_s22 = smov 104  }
  0x4f   : > { %635 = vmatpush.bf16.msra.mxu1 %v1249_v6  ;;  %v1375_v8 = vld [vmem:[%s2053_s6] ss:$0 sm:$0xff]  ;;  %vm721_vm3 = vcmask 1043456   ;;  %vm741_vm4 = vcmask 60416   ;;  %s1710_s10 = smov 8   ;;  %s1711_s12 = smov 16  }
  0x50   : > { %v568_v9 = vld [vmem:[%s492_s24] sm:$0xf]  ;;  %s1712_s28 = smov 24   ;;  %vm815_vm5 = vcmask 126016   ;;  %vm886_vm6 = vcmask 191616   ;;  %vm957_vm7 = vcmask 257216  }
  0x51   : > { %600 = vmatpush.bf16.msra.mxu0 %v1246_v2  ;;  %679 = vmatpush.bf16.msra.mxu2 %v1250_v3  ;;  %v1376_v13 = vld [vmem:[%s2051_s4] ss:$0 sm:$0xff]  ;;  %s1243_s21 = sshll.u32 %s1691_s20, 3  ;;  %s1197_s26 = sshll.u32 %s1930_s15, 3 }
  0x52   : > { %v1377_v32 = vld [vmem:[%s2055_s8] ss:$0 sm:$0xff]  ;;  %s1009_s9 = scalar_lea.hbm %s2058_s11, %s1243_s21  ;;  %s2103_s27 = sld [smem:[#allocation36_spill]] }
  0x53   : > { %636 = vmatpush.bf16.msra.mxu1 %v1248_v7  ;;  %s561_s24 = scalar_lea.vmem [#allocation17], %s1197_s26  ;;  %s1013_s14 = sshll.u32 %s1009_s9, 4  ;;  %s1014_s14 = int_to_ptr.hbm [resolvable:$true] %s1013_s14 }
  0x54   : > { %1206 = vmatmul.msk.bf16.vlgmr.msra.gmra.mxu0 %vm589_vm0, %v567_v4  ;;  %1224 = vmatmul.msk.bf16.vlgmr.msra.gmra.mxu2 %vm589_vm0, %v647_v5  ;;  %s1011_s23 = sshll.u32 %s561_s24, 4  ;;  %s998_s20 = scalar_lea.sflag [#allocation7], %s1930_s15  ;;  %s1012_s23 = int_to_ptr.vmem [resolvable:$true] %s1011_s23 }
  0x55   : > { %s1619_s29 = sshra.s32 %s1014_s14, 4  ;;  %s1620_s29 = int_to_ptr.hbm [resolvable:$true] %s1619_s29 }
  0x56   : > { %1215 = vmatmul.msk.bf16.vlgmr.msra.gmra.mxu1 %vm589_vm0, %v568_v9  ;;  %s1621_s25 = scalar_lea.hbm %s1620_s29, 8  ;;  %p1626_p10 = scmp.lt.s32.totalorder %s1620_s29, %s2058_s11 }
  0x57   : > { %p1622_p1 = scmp.ne.s32.totalorder %s1620_s29, %s1621_s25 }
  0x59   : > { %p1623_p3 = pnand %p1622_p1, %p1861_p2 }
  0x5b   : > { %p1624_p5 = pneg %p1623_p3 }
  0xd1   : > { %v602_v10 = vpop.f32.mrf.mxu0 }
  0xd2   : > { %v603_v11 = vadd.f32 %v1375_v8, %v602_v10 }
  0xd3   : > { %v638_v33 = vpop.f32.mrf.mxu1 }
  0xd4   : > { %v642_v12 = vpack.c.bf16 %v603_v11, %v603_v11  ;;  %v639_v34 = vadd.f32 %v1377_v32, %v638_v33 }
  0xd6   : > { %644 = vst.msk [vmem:[#allocation2] sm:$0xf] %vm643_vm1, %v642_v12  ;;  %v645_v39 = vpack.c.bf16 %v639_v34, %v639_v34 }
  0xd7   : > { %v681_v14 = vpop.f32.mrf.mxu2 }
  0xd8   : > { %v682_v15 = vadd.f32 %v1376_v13, %v681_v14  ;;  %646 = vst.msk [vmem:[#allocation3] sm:$0xf] %vm643_vm1, %v645_v39 }
  0xd9   : > { %v604_v16 = vpop.f32.mrf.mxu0 }
  0xda   : > { %v685_v17 = vpack.c.bf16 %v682_v15, %v682_v15 }
  0xdb   : > { %v640_v40 = vpop.f32.mrf.mxu1 }
  0xdc   : > { %v746_v18 = vunpack.c.l.b16 %v685_v17 }
  0xdd   : > { %v686_v19 = vld [vmem:[#allocation2] sm:$0xf] }
  0xde   : > { %v817_v20 = vld [vmem:[#allocation2] sm:$0xf]  ;;  %v747_v22 = vpack.c.b16 %v746_v18, %v746_v18  ;;  %v693_v23 = vsel %vm688_vm2, %v686_v19, 0 }
  0xdf   : > { %v743_v21 = vld [vmem:[#allocation2] sm:$0xf]  ;;  %v822_v24 = vunpack.c.l.b16 %v817_v20  ;;  %702 = vmatpush.bf16.xpose.msra.mxu3 %v693_v23  ;;  %v683_v26 = vpop.f32.mrf.mxu2  ;;  %v687_v45 = vld [vmem:[#allocation3] sm:$0xf] }
  0xe0   : > { %v751_v25 = vunpack.c.l.b16 %v743_v21  ;;  %819 = vrot.lane.b32.xlu2 %v747_v22, %s1707_s16  ;;  %v888_v29 = vld [vmem:[#allocation2] sm:$0xf]  ;;  %v723_v46 = vsel %vm721_vm3, %v687_v45, 0  ;;  %v744_v47 = vld [vmem:[#allocation3] sm:$0xf] }
  0xe1   : > { %v823_v27 = vpack.c.b16 %v822_v24, %v822_v24  ;;  %v893_v30 = vunpack.c.l.b16 %v888_v29  ;;  %732 = vmatpush.bf16.msrb.mxu0 %v723_v46  ;;  %v785_v48 = vunpack.c.l.b16 %v744_v47  ;;  %v889_v54 = vld [vmem:[#allocation3] sm:$0xf] }
  0xe2   : > { %v752_v28 = vpack.c.b16 %v751_v25, %v751_v25  ;;  %v927_v55 = vunpack.c.l.b16 %v889_v54  ;;  %v818_v12 = vld [vmem:[#allocation3] sm:$0xf] }
  0xe3   : > { %824 = vrot.lane.b32.xlu1 %v823_v27, %s1707_s16  ;;  %v894_v31 = vpack.c.b16 %v893_v30, %v893_v30  ;;  %v786_v49 = vpack.c.b16 %v785_v48, %v785_v48  ;;  %v856_v13 = vunpack.c.l.b16 %v818_v12 }
  0xe4   : > { %753 = vrot.lane.b32.xlu0 %v752_v28, %s1708_s17  ;;  %v928_v56 = vpack.c.b16 %v927_v55, %v927_v55 }
  0xe5   : > { %v857_v14 = vpack.c.b16 %v856_v13, %v856_v13 }
  0xe6   : > { %1225 = vmatmul.msk.bf16.vlgmr.msra.gmra.mxu3 %vm688_vm2, %v685_v17 }
  0xe8   : > { %890 = vrot.lane.b32.xlu2 %v747_v22, %s1709_s22 }
  0xeb   : > { %895 = vrot.lane.b32.xlu1 %v894_v31, %s1709_s22 }
  0xec   : > { %748 = vrot.lane.b32.xlu0 %v747_v22, %s1708_s17 }
  0xf0   : > { %787 = vrot.lane.b32.xlu2 %v786_v49, %s1708_s17 }
 0x13a   : > { %v820_v41 = vpop.permute.xlu2 %819 }
 0x142   : > { %v891_v52 = vpop.permute.xlu2 %890 }
 0x14a   : > { %v788_v1 = vpop.permute.xlu2 %787 }
 0x14b   : > { %v793_v2 = vsel %vm721_vm3, %v788_v1, 0  ;;  %v1378_v1 = vld [vmem:[%s2103_s27] ss:$0 sm:$0xff] }
 0x14c   : > { %802 = vmatpush.bf16.msrb.mxu2 %v793_v2 }
 0x155   : > { %v825_v35 = vpop.permute.xlu1 %824 }
 0x156   : > { %v754_v36 = vpop.permute.xlu0 %753  ;;  %v830_v38 = vsel %vm688_vm2, %v825_v35, 0 }
 0x157   : > { %v759_v37 = vsel %vm688_vm2, %v754_v36, 0  ;;  %839 = vmatpush.bf16.xpose.msrb.mxu3 %v830_v38 }
 0x158   : > { %768 = vmatpush.bf16.xpose.msrb.mxu1 %v759_v37 }
 0x15d   : > { %v896_v42 = vpop.permute.xlu1 %895 }
 0x15e   : > { %v749_v43 = vpop.permute.xlu0 %748  ;;  %v901_v44 = vsel %vm688_vm2, %v896_v42, 0  ;;  %1229 = vmatmul.msk.bf16.vlgmr.msrb.gmra.mxu3 %vm688_vm2, %v820_v41 }
 0x15f   : > { %1227 = vmatmul.msk.bf16.vlgmr.msrb.gmra.mxu1 %vm688_vm2, %v749_v43 }
 0x160   : > { %910 = vmatpush.bf16.xpose.msra.mxu1 %v901_v44 }
 0x169   : > { %v704_v50 = vpop.f32.mrf.mxu3 }
 0x16a   : > { %v708_v51 = vsel %vm688_vm2, %v704_v50, -inf }
 0x16b   : > { %709 = vmax.xlane.f32.xlu1 %v708_v51 }
 0x16f   : > { %1231 = vmatmul.msk.bf16.vlgmr.msra.gmra.mxu1 %vm688_vm2, %v891_v52 }
 0x171   : > { %v706_v53 = vpop.f32.mrf.mxu3 }
 0x184   : > { %929 = vrot.lane.b32.xlu1 %v928_v56, %s1709_s22  ;;  %s1625_s22 = scalar_lea.hbm %s2058_s11, 16 }
 0x185   : > { %p1627_p11 = scmp.lt.s32.totalorder %s1625_s22, %s1621_s25 }
 0x187   : > { %p1628_p12 = por %p1627_p11, %p1626_p10 }
 0x189   : > { %p1629_p13 = pnand %p1628_p12, %p1624_p5 }
 0x1dc   : > { %v770_v57 = vpop.f32.mrf.mxu1 }
 0x1dd   : > { %v774_v58 = vsel %vm688_vm2, %v770_v57, -inf }
 0x1de   : > { %775 = vmax.xlane.f32.xlu0 %v774_v58  ;;  %v710_v59 = vpop.xlane.xlu1 %709 }
 0x1df   : > { %v711_v60 = vsub.f32 %v704_v50, %v710_v59 }
 0x1e1   : > { %v841_v61 = vpop.f32.mrf.mxu3  ;;  %v712_v62 = vmul.f32 1.442695, %v711_v60  ;;  %v1253_v60 = vld [vmem:[#allocation16 + $0x8] sm:$0xff] }
 0x1e2   : > { %v845_v0 = vsel %vm688_vm2, %v841_v61, -inf  ;;  %989 = vmatpush.bf16.msra.mxu3 %v1253_v60 }
 0x1e3   : > { %1379 = vpow2.f32 %v712_v62 }
 0x1e4   : > { %v772_v63 = vpop.f32.mrf.mxu1 }
 0x1e6   : > { %846 = vmax.xlane.f32.xlu0 %v845_v0 }
 0x1e9   : > { %v843_v3 = vpop.f32.mrf.mxu3  ;;  %v1380_v4 = vpop.eup %1379 }
 0x1ea   : > { %v714_v6 = vsel %vm688_vm2, %v1380_v4, 0.0  ;;  %v717_v7 = vpack.c.bf16 %v1380_v4, %v1380_v4 }
 0x1eb   : > { %715 = vadd.xlane.f32.xlu1 %v714_v6 }
 0x1ec   : > { %v912_v5 = vpop.f32.mrf.mxu1  ;;  %1226 = vmatmul.msk.bf16.vlgmr.msrb.gmra.mxu0 %vm688_vm2, %v717_v7 }
 0x1ed   : > { %v916_v8 = vsel %vm688_vm2, %v912_v5, -inf }
 0x1ee   : > { %917 = vmax.xlane.f32.xlu2 %v916_v8 }
 0x1f4   : > { %v914_v9 = vpop.f32.mrf.mxu1 }
 0x1f6   : > { %v930_v10 = vpop.permute.xlu1 %929 }
 0x1f7   : > { %v935_v11 = vsel %vm721_vm3, %v930_v10, 0 }
 0x1f8   : > { %944 = vmatpush.bf16.msra.mxu2 %v935_v11 }
 0x206   : > { %858 = vrot.lane.b32.xlu2 %v857_v14, %s1707_s16 }
 0x251   : > { %v776_v15 = vpop.xlane.xlu0 %775 }
 0x252   : > { %v777_v16 = vsub.f32 %v770_v57, %v776_v15 }
 0x254   : > { %v778_v17 = vmul.f32 1.442695, %v777_v16 }
 0x256   : > { %1381 = vpow2.f32 %v778_v17 }
 0x259   : > { %v847_v18 = vpop.xlane.xlu0 %846 }
 0x25a   : > { %v848_v19 = vsub.f32 %v841_v61, %v847_v18  ;;  %v1252_v61 = vld [vmem:[#allocation16] sm:$0xff] }
 0x25b   : > { %990 = vmatpush.bf16.msra.mxu3 %v1252_v61 }
 0x25c   : > { %v1382_v20 = vpop.eup %1381  ;;  %v849_v21 = vmul.f32 1.442695, %v848_v19 }
 0x25d   : > { %v780_v22 = vsel %vm688_vm2, %v1382_v20, 0.0  ;;  %v783_v23 = vpack.c.bf16 %v1382_v20, %v1382_v20 }
 0x25e   : > { %1383 = vpow2.f32 %v849_v21  ;;  %781 = vadd.xlane.f32.xlu0 %v780_v22  ;;  %v716_v25 = vpop.xlane.xlu1 %715 }
 0x25f   : > { %1228 = vmatmul.msk.bf16.vlgmr.msrb.gmra.mxu2 %vm688_vm2, %v783_v23  ;;  %1385 = vrcp.f32 %v716_v25 }
 0x261   : > { %v918_v24 = vpop.xlane.xlu2 %917 }
 0x262   : > { %v919_v26 = vsub.f32 %v912_v5, %v918_v24 }
 0x264   : > { %v1384_v27 = vpop.eup %1383  ;;  %v920_v28 = vmul.f32 1.442695, %v919_v26 }
 0x265   : > { %v851_v29 = vsel %vm688_vm2, %v1384_v27, 0.0  ;;  %v1386_v32 = vpop.eup %1385  ;;  %v854_v35 = vpack.c.bf16 %v1384_v27, %v1384_v27 }
 0x266   : > { %1387 = vpow2.f32 %v920_v28  ;;  %852 = vadd.xlane.f32.xlu0 %v851_v29 }
 0x269   : > { %v859_v30 = vpop.permute.xlu2 %858  ;;  %v734_v33 = vpop.f32.mrf.mxu0 }
 0x26a   : > { %v864_v31 = vsel %vm721_vm3, %v859_v30, 0  ;;  %v739_v36 = vmul.f32 %v1386_v32, %v734_v33 }
 0x26b   : > { %873 = vmatpush.bf16.msra.mxu0 %v864_v31 }
 0x26c   : > { %v1388_v34 = vpop.eup %1387  ;;  %v740_v39 = vpack.c.bf16 %v739_v36, %v739_v36 }
 0x26d   : > { %v925_v37 = vpack.c.bf16 %v1388_v34, %v1388_v34  ;;  %v922_v38 = vsel %vm688_vm2, %v1388_v34, 0.0 }
 0x26e   : > { %1230 = vmatmul.msk.bf16.vlgmr.msra.gmra.mxu0 %vm688_vm2, %v854_v35  ;;  %923 = vadd.xlane.f32.xlu0 %v922_v38  ;;  %742 = vst.msk [vmem:[#allocation4] sm:$0xf] %vm741_vm4, %v740_v39 }
 0x26f   : > { %1232 = vmatmul.msk.bf16.vlgmr.msra.gmra.mxu2 %vm688_vm2, %v925_v37 }
 0x271   : > { %v736_v40 = vpop.f32.mrf.mxu0 }
 0x2d1   : > { %v782_v41 = vpop.xlane.xlu0 %781 }
 0x2d2   : > { %1389 = vrcp.f32 %v782_v41 }
 0x2d8   : > { %v1390_v43 = vpop.eup %1389 }
 0x2d9   : > { %v853_v42 = vpop.xlane.xlu0 %852 }
 0x2da   : > { %1391 = vrcp.f32 %v853_v42 }
 0x2e0   : > { %v1392_v49 = vpop.eup %1391 }
 0x2e1   : > { %v924_v47 = vpop.xlane.xlu0 %923 }
 0x2e2   : > { %v804_v44 = vpop.f32.mrf.mxu2  ;;  %1393 = vrcp.f32 %v924_v47 }
 0x2e3   : > { %v809_v45 = vmul.f32 %v1390_v43, %v804_v44 }
 0x2e5   : > { %v810_v46 = vpack.c.bf16 %v809_v45, %v809_v45 }
 0x2e7   : > { %812 = vrot.lane.b32.xlu2 %v810_v46, %s1710_s10 }
 0x2e8   : > { %v1394_v53 = vpop.eup %1393 }
 0x2ea   : > { %v806_v48 = vpop.f32.mrf.mxu2 }
 0x2eb   : > { %v875_v50 = vpop.f32.mrf.mxu0 }
 0x2ec   : > { %v880_v51 = vmul.f32 %v1392_v49, %v875_v50 }
 0x2ee   : > { %v881_v52 = vpack.c.bf16 %v880_v51, %v880_v51 }
 0x2f0   : > { %883 = vrot.lane.b32.xlu0 %v881_v52, %s1711_s12 }
 0x2f2   : > { %v946_v54 = vpop.f32.mrf.mxu2 }
 0x2f3   : > { %v951_v55 = vmul.f32 %v1394_v53, %v946_v54  ;;  %v877_v56 = vpop.f32.mrf.mxu0 }
 0x2f5   : > { %v952_v57 = vpack.c.bf16 %v951_v55, %v951_v55 }
 0x2f7   : > { %954 = vrot.lane.b32.xlu2 %v952_v57, %s1712_s28 }
 0x2fa   : > { %v948_v58 = vpop.f32.mrf.mxu2 }
 0x341   : > { %v813_v59 = vpop.permute.xlu2 %812 }
 0x342   : > { %816 = vst.msk [vmem:[#allocation4] sm:$0xf] %vm815_vm5, %v813_v59 }
 0x351   : > { %v955_v63 = vpop.permute.xlu2 %954 }
 0x362   : > { %v884_v62 = vpop.permute.xlu0 %883 }
 0x363   : > { %887 = vst.msk [vmem:[#allocation4] sm:$0xf] %vm886_vm6, %v884_v62 }
 0x364   : > { %958 = vst.msk [vmem:[#allocation4] sm:$0xf] %vm957_vm7, %v955_v63 }
 0x36b   : > { %v959_v0 = vld [vmem:[#allocation4] sm:$0xf] }
 0x36c   : > { %1241 = vmatmul.msk.bf16.vlgmr.msra.gmra.mxu3 %vm589_vm0, %v959_v0 }
 0x3ef   : > { %v992_v2 = vpop.f32.mrf.mxu3 }
 0x3f0   : > { %v993_v3 = vadd.f32 %v1378_v1, %v992_v2 }
 0x3f2   : > { %996 = vst.msk [vmem:[%s561_s24] sm:$0xff] %vm589_vm0, %v993_v3 }
 0x3f3   : > { %1632 = shalt.err (!%p1629_p13)
}
 0x3f4   : > { %1276 = dma.vmem_to_hbm [thread:$0]  (%p1861_p2), %s1012_s23, 128, %s1014_s14, %s998_s20  }
 0x3f7   : > { %v994_v4 = vpop.f32.mrf.mxu3 }
 0x3f8 PF: > { %s2104_s15 = sld [smem:[#allocation23_spill]]  ;;  %p1302_p0 = pnand %p1182_p6, %p1868_p7 }
 0x3f9   : > { %s2106_s12 = sld [smem:[#allocation25_spill]] }
 0x3fa   : > { %p1303_p4 = pneg %p1302_p0 }
 0x3fe   : > { %s1025_s28 = sand.u32 1, %s2104_s15  }
 0x3ff   : > { %s1026_s21 = scalar_lea.sflag [#allocation7], %s1025_s28 }
 0x400   : > { %1674 = dma.done.wait (%p1303_p4), %s1026_s21, 128  }
 0x401   : > { %1676 = vsyncadd (%p1303_p4), %s1026_s21, 4294967168  ;;  %s32_s22 = sadd.s32 1, %s2106_s12   ;;  %s2107_s26 = sld [smem:[#allocation28_spill]] }
 0x402   : > { %p29_p9 = scmp.ge.s32.totalorder %s32_s22, 4   ;;  %s2108_s20 = sld [smem:[#allocation24_spill]] }
 0x403   : > { %s2109_s21 = sld [smem:[#allocation26_spill]]  ;;  %s2110_s17 = smov %s1683_s18 }
 0x404   : > { %s2111_s18 = smov %s1687_s19  ;;  %31 = sbr.rel (!%p29_p9) target bundleno = 18 (0x12), region = 153 }
 0x407   : > { %s2112_s19 = smov %s2107_s26 }
 0x409   :  { %1032 = vsyncpa [#allocation6], 1 }
 0x40a   :  { %1034 = vsyncpa [#allocation6 + $0x1], 1 }
 0x40b   :  { %1035 = vsyncpa [#allocation9], 1 }
 0x40c   :  { %1037 = vsyncpa [#allocation9 + $0x1], 1 }
 0x40d   :  { %1038 = vsyncpa [#allocation12], 1 }
 0x40e   :  { %1039 = vsyncpa [#allocation15], 1 }
 0x40f   :  { %1040 = vsyncpa [#allocation7], 1 }
 0x410   :  { %1042 = vsyncpa [#allocation7 + $0x1], 1 }

</bundles_post_ra>
